<compile_context>
chip_gen: v5e
topology: v5e:2x2
jax: 0.10.0
libtpu: 0.0.40
codegen_flags: <defaults>
</compile_context>

<pallas_src>
import numpy as np

import jax
import jax.numpy as jnp
from jax.experimental import pallas as pl
from jax.experimental.pallas import tpu as pltpu


# ------------------------------ fused kernel --------------------------------

def fused_cnn_kernel(x_ref, r1e_ref, r1o_ref, s1_ref, r2_ref, s2_ref,
                     r3_ref, s3_ref, w1_ref, b1_ref, w2_ref, b2_ref, out_ref):
    f32, bf16 = jnp.float32, jnp.bfloat16
    bt = x_ref.shape[1]            # batch tile; multiple of 8 -> tile-aligned reshapes

    def kstack(a, h_out):
        """Lane-concat of the 3 dy-shifted row slabs -> one fat-K matmul LHS."""
        return jnp.concatenate(
            [a[dy * bt:(dy + h_out) * bt, :] for dy in range(3)], axis=1)

    def hpool(y, h):
        """MaxPool along H: rows are (h, b) so this is a free leading-dim reshape."""
        n = y.shape[1]
        yv = y.reshape(h // 2, 2, bt, n)
        return jnp.maximum(yv[:, 0], yv[:, 1]).reshape((h // 2) * bt, n)

    # --- block 1: Conv(1->10,3x3) + BN + ReLU + MaxPool(2): 28x28 -> 13x13x10 --
    x = x_ref[...].reshape(28 * bt, 28)                       # bf16, rows (h,b), cols w
    l1 = kstack(x, 26)                                        # (26*bt, 84)
    ye = jnp.dot(l1, r1e_ref[...], preferred_element_type=f32)   # even W outputs
    yo = jnp.dot(l1, r1o_ref[...], preferred_element_type=f32)   # odd  W outputs
    y1 = jnp.maximum(jnp.maximum(ye, yo) + s1_ref[...], 0.0)  # W-pool + BN shift + ReLU
    a1 = hpool(y1, 26).astype(bf16)                           # (13*bt, 130)

    # --- block 2: Conv(10->20,3x3) + BN + ReLU + MaxPool(2): 13x13 -> 5x5x20 ---
    l2 = kstack(a1, 11)                                       # (11*bt, 390)
    y2 = jnp.dot(l2, r2_ref[...], preferred_element_type=f32) # even|odd N-fused, (11*bt, 200)
    y2 = jnp.maximum(jnp.maximum(y2[:, :100], y2[:, 100:]) + s2_ref[...], 0.0)
    a2 = hpool(y2[:10 * bt, :], 10).astype(bf16)              # drop row 10 (floor pool) -> (5*bt, 100)

    # --- block 3: Conv(20->30,3x3) + BN + ReLU (Dropout2d p=0): 5x5 -> 3x3x30 --
    l3 = kstack(a2, 3)                                        # (3*bt, 300)
    a3 = jnp.maximum(jnp.dot(l3, r3_ref[...], preferred_element_type=f32)
                     + s3_ref[...], 0.0).astype(bf16)         # (3*bt, 90)

    # --- fc head: Linear(270->270)+ReLU (+Dropout p=0) + Linear + LogSoftmax ---
    # torch NCHW flatten order is folded into w1 at prep time.
    f = kstack(a3, 1)                                         # (bt, 270)
    z1 = jnp.maximum(jnp.dot(f, w1_ref[...], preferred_element_type=f32)
                     + b1_ref[...], 0.0)
    z2 = jnp.dot(z1.astype(bf16), w2_ref[...], preferred_element_type=f32) + b2_ref[...]
    m = jnp.max(z2, axis=-1, keepdims=True)
    lse = jnp.log(jnp.sum(jnp.exp(z2 - m), axis=-1, keepdims=True)) + m
    out_ref[...] = (z2 - lse).astype(out_ref.dtype)           # lane-dense (bt, 128)


# ------------------------------ public wrapper -------------------------------

def _round_up(n, m):
    return -(-n // m) * m


def _pick_batch_tile(B, batch_tile):
    bt = min(batch_tile, _round_up(max(B, 1), 8))
    if B > 8:
        # keep >= 2 grid steps when possible so both v7x TensorCores get work
        bt = min(bt, _round_up(-(-B // 2), 8))
    return max(8, bt)


def _vmem_limit_bytes(bt):
    # ~128 KiB live per image (f32 conv1 slabs dominate) + weights/input slack.
    want = max(16 << 20, (6 << 20) + bt * (128 << 10))
    try:
        cap = int(pltpu.get_tpu_info().vmem_capacity_bytes) - (8 << 20)
    except Exception:
        cap = 56 << 20          # safe headroom under v7x's 64 MiB physical VMEM
    return int(min(want, cap))


def mycnn_forward(kparams, x_in, *, n_classes, batch_tile=256, input_is_hbw=False):
    """Fused forward pass: one pallas_call, grid over batch tiles."""
    B = x_in.shape[1] if input_is_hbw else x_in.shape[0]
    bt = _pick_batch_tile(B, batch_tile)
    assert bt % 8 == 0
    n_tiles = -(-B // bt)
    Bp = n_tiles * bt
    ncp = kparams['w2'].shape[1]                      # padded (lane-dense) class count

    # Only XLA-side data movement: cast to bf16, put batch into the sublane slot
    # (layout (H, B, W)) and zero-pad B to a multiple of the batch tile.  Producers
    # that already emit (H, B, W) can set input_is_hbw=True and skip the transpose.
    if input_is_hbw:
        x = x_in.astype(jnp.bfloat16)
    else:
        x = x_in.astype(jnp.bfloat16).reshape(B, 28, 28)
        x = jnp.transpose(x, (1, 0, 2))
    if Bp != B:
        x = jnp.pad(x, ((0, 0), (0, Bp - B), (0, 0)))

    weights = [kparams[k] for k in
               ('r1e', 'r1o', 's1', 'r2', 's2', 'r3', 's3', 'w1', 'b1', 'w2', 'b2')]

    def const_spec(a):
        nd = a.ndim
        def imap(g):
            return (0,) * nd
        return pl.BlockSpec(a.shape, imap)   # grid-invariant: loaded once, stays in VMEM

    flops_tile = (2 * 2 * 26 * bt * 84 * 130      # conv1 even + odd (K-stacked)
                  + 2 * 11 * bt * 390 * 200       # conv2 (K-stacked, N-fused)
                  + 2 * 3 * bt * 300 * 90         # conv3
                  + 2 * bt * 270 * 270            # fc1
                  + 2 * bt * 270 * ncp)           # fc2 (padded)
    wbytes = sum(int(np.prod(w.shape)) * w.dtype.itemsize for w in weights)
    cost = pl.CostEstimate(
        flops=int(flops_tile * n_tiles),
        transcendentals=int((ncp + 1) * Bp),
        bytes_accessed=int(Bp * 28 * 28 * 2 + wbytes + Bp * ncp * 4))

    out = pl.pallas_call(
        fused_cnn_kernel,
        out_shape=jax.ShapeDtypeStruct((Bp, ncp), jnp.float32),
        grid=(n_tiles,),
        in_specs=[pl.BlockSpec((28, bt, 28), lambda g: (0, g, 0))]
                 + [const_spec(w) for w in weights],
        out_specs=pl.BlockSpec((bt, ncp), lambda g: (g, 0)),
        compiler_params=pltpu.CompilerParams(
            dimension_semantics=("parallel",),          # batch tiles independent
            vmem_limit_bytes=_vmem_limit_bytes(bt)),
        cost_estimate=cost,
    )(x, *weights)
    return out[:B, :n_classes]


# ------------------------ parameter init & kernel prep -----------------------

def _init_conv_block(keys, cin, cout):
    kw_, kb, kg, kbeta, km, kv = keys
    w = 0.1 * jax.random.normal(kw_, (3, 3, cin, cout), jnp.float32)       # HWIO
    b = 0.1 * jax.random.normal(kb, (cout,), jnp.float32)
    gamma = 1.0 + 0.1 * jax.random.normal(kg, (cout,), jnp.float32)
    beta = 0.1 * jax.random.normal(kbeta, (cout,), jnp.float32)
    mean = 0.1 * jax.random.normal(km, (cout,), jnp.float32)
    var = jax.random.uniform(kv, (cout,), jnp.float32, 0.5, 1.5)
    eps = 1e-5
    scale = gamma / jnp.sqrt(var + eps)               # eval-mode BN fold
    shift = (b - mean) * scale + beta
    return dict(w_hwio=w, scale=scale.reshape(1, cout), shift=shift.reshape(1, cout))


def init_params(key, n_classes):
    ks = jax.random.split(key, 22)
    return dict(
        c1=_init_conv_block(ks[0:6], 1, 10),
        c2=_init_conv_block(ks[6:12], 10, 20),
        c3=_init_conv_block(ks[12:18], 20, 30),
        fc1_w=0.05 * jax.random.normal(ks[18], (270, 270), jnp.float32),
        fc1_b=(0.05 * jax.random.normal(ks[19], (270,), jnp.float32)).reshape(1, 270),
        fc2_w=0.05 * jax.random.normal(ks[20], (270, n_classes), jnp.float32),
        fc2_b=(0.05 * jax.random.normal(ks[21], (n_classes,), jnp.float32)).reshape(1, n_classes),
    )


def _banded_kstacked(w_folded, w_in, out_positions):
    """BN-folded HWIO conv weights (3,3,Cin,Cout) -> K-stacked banded RHS
    (3*w_in*Cin, len(out_positions)*Cout):
    M[dy*w_in*Cin + (jo+dx)*Cin + ci, oi*Cout + co] = w[dy, dx, ci, co]."""
    w_np = np.asarray(w_folded, np.float32)
    kh, kw, cin, cout = w_np.shape
    n = len(out_positions)
    m = np.zeros((kh * w_in * cin, n * cout), np.float32)
    for dy in range(kh):
        base = dy * w_in * cin
        for oi, jo in enumerate(out_positions):
            for dx in range(kw):
                m[base + (jo + dx) * cin: base + (jo + dx + 1) * cin,
                  oi * cout:(oi + 1) * cout] = w_np[dy, dx]
    return m


def prepare_kernel_params(params):
    """Host-side prep: fold BN scale into conv weights, build K-stacked banded
    matrices split by output-column parity (fuses the W half of MaxPool2; conv2
    even/odd additionally fused along N), tile BN shifts along W, fold torch's
    NCHW flatten order into fc1, pad fc2 to lane-dense 128 output columns, and
    pre-cast all matmul operands to bf16 (f32 accumulation in-kernel)."""
    def fold(layer):
        return (np.asarray(layer['w_hwio'], np.float32)
                * np.asarray(layer['scale'], np.float32)[0])

    w1f, w2f, w3f = fold(params['c1']), fold(params['c2']), fold(params['c3'])

    even26, odd26 = list(range(0, 26, 2)), list(range(1, 26, 2))   # conv1: 26 -> 13 pooled
    even10, odd10 = list(range(0, 10, 2)), list(range(1, 10, 2))   # conv2: 11 -> 5 (col 10 dropped)

    r1e = _banded_kstacked(w1f, 28, even26)                        # (84, 130)
    r1o = _banded_kstacked(w1f, 28, odd26)                         # (84, 130)
    r2 = np.concatenate([_banded_kstacked(w2f, 13, even10),
                         _banded_kstacked(w2f, 13, odd10)], axis=1)  # (390, 200)
    r3 = _banded_kstacked(w3f, 5, [0, 1, 2])                       # (300, 90)

    # fc1: torch flatten index c*9 + i*3 + j  ->  our fc-input column i*90 + j*30 + c.
    fc1 = np.asarray(params['fc1_w'], np.float32)
    rows = np.array([c * 9 + i * 3 + j
                     for i in range(3) for j in range(3) for c in range(30)], np.int64)
    w1p = fc1[rows, :]                                             # (270, 270)

    # fc2: pad outputs to a lane-dense multiple of 128; -1e30 bias makes the
    # padded logits underflow to exactly 0 inside the softmax sum.
    fc2_w = np.asarray(params['fc2_w'], np.float32)
    fc2_b = np.asarray(params['fc2_b'], np.float32)
    nc = fc2_w.shape[1]
    ncp = max(128, _round_up(nc, 128))
    w2p = np.zeros((fc2_w.shape[0], ncp), np.float32)
    w2p[:, :nc] = fc2_w
    b2p = np.full((1, ncp), -1e30, np.float32)
    b2p[0, :nc] = fc2_b[0]

    bf16 = jnp.bfloat16
    return dict(
        r1e=jnp.asarray(r1e, bf16), r1o=jnp.asarray(r1o, bf16),
        r2=jnp.asarray(r2, bf16), r3=jnp.asarray(r3, bf16),
        s1=jnp.tile(params['c1']['shift'], (1, 13)).astype(jnp.float32),
        s2=jnp.tile(params['c2']['shift'], (1, 5)).astype(jnp.float32),
        s3=jnp.tile(params['c3']['shift'], (1, 3)).astype(jnp.float32),
        w1=jnp.asarray(w1p, bf16),
        b1=params['fc1_b'].astype(jnp.float32),
        w2=jnp.asarray(w2p, bf16),
        b2=jnp.asarray(b2p, jnp.float32),
    )


# ----------------------------- pure-JAX reference ----------------------------

def reference_forward(params, x_nchw):
    def conv_bn_relu_ref(x, layer):
        w = jnp.transpose(layer['w_hwio'], (3, 2, 0, 1))   # HWIO -> OIHW
        y = jax.lax.conv_general_dilated(
            x, w, (1, 1), 'VALID', dimension_numbers=('NCHW', 'OIHW', 'NCHW'))
        s = layer['scale'][0][None, :, None, None]
        t = layer['shift'][0][None, :, None, None]
        return jnp.maximum(y * s + t, 0.0)

    def pool_ref(x):
        B, C, H, W = x.shape
        Ho, Wo = H // 2, W // 2
        return x[:, :, :2 * Ho, :2 * Wo].reshape(B, C, Ho, 2, Wo, 2).max(axis=(3, 5))

    h = pool_ref(conv_bn_relu_ref(x_nchw, params['c1']))
    h = pool_ref(conv_bn_relu_ref(h, params['c2']))
    h = conv_bn_relu_ref(h, params['c3'])
    h = h.reshape(h.shape[0], -1)
    z1 = jnp.maximum(h @ params['fc1_w'] + params['fc1_b'][0], 0.0)
    z2 = z1 @ params['fc2_w'] + params['fc2_b'][0]
    return jax.nn.log_softmax(z2, axis=1)


# ----------------------------------- main -------------------------------------

if __name__ == "__main__":
    key = jax.random.PRNGKey(0)
    kx, kparam = jax.random.split(key)

    n_classes, B = 10, 2
    # 28x28 single-channel input (MNIST-like) is implied by fc in_features = 30*3*3.
    x = jax.random.normal(kx, (B, 1, 28, 28), jnp.float32)
    params = init_params(kparam, n_classes)
    kparams = prepare_kernel_params(params)

    fwd = jax.jit(mycnn_forward,
                  static_argnames=("n_classes", "batch_tile", "input_is_hbw"))
    out = jax.block_until_ready(fwd(kparams, x, n_classes=n_classes))
    assert out.shape == (B, n_classes), out.shape

    ref = reference_forward(params, x)
    # bf16 matmul operands with f32 accumulation -> slightly relaxed tolerance.
    assert bool(jnp.allclose(out, ref, atol=3e-2, rtol=3e-2)), "mismatch vs reference"

    print("KERNEL_OK")
</pallas_src>

<mosaic_0001>
module attributes {stable_mosaic.version = 11 : i64} {
  func.func @fused_cnn_kernel(%arg0: i32, %arg1: memref<28x8x28xbf16, #tpu.memory_space<vmem>>, %arg2: memref<84x130xbf16, #tpu.memory_space<vmem>>, %arg3: memref<84x130xbf16, #tpu.memory_space<vmem>>, %arg4: memref<1x130xf32, #tpu.memory_space<vmem>>, %arg5: memref<390x200xbf16, #tpu.memory_space<vmem>>, %arg6: memref<1x100xf32, #tpu.memory_space<vmem>>, %arg7: memref<300x90xbf16, #tpu.memory_space<vmem>>, %arg8: memref<1x90xf32, #tpu.memory_space<vmem>>, %arg9: memref<270x270xbf16, #tpu.memory_space<vmem>>, %arg10: memref<1x270xf32, #tpu.memory_space<vmem>>, %arg11: memref<270x128xbf16, #tpu.memory_space<vmem>>, %arg12: memref<1x128xf32, #tpu.memory_space<vmem>>, %arg13: memref<8x128xf32, #tpu.memory_space<vmem>>) attributes {dimension_semantics = [#tpu.dimension_semantics<parallel>], iteration_bounds = array<i64: 1>, scalar_prefetch = 0 : i64, scratch_operands = 0 : i64, tpu.core_type = #tpu.core_type<tc>, window_params = [{transform_indices = @transform_0, window_bounds = array<i64: 28, 8, 28>}, {pipeline_mode = #tpu.pipeline_mode<synchronous>, transform_indices = @transform_1, window_bounds = array<i64: 84, 130>}, {pipeline_mode = #tpu.pipeline_mode<synchronous>, transform_indices = @transform_2, window_bounds = array<i64: 84, 130>}, {pipeline_mode = #tpu.pipeline_mode<synchronous>, transform_indices = @transform_3, window_bounds = array<i64: 1, 130>}, {pipeline_mode = #tpu.pipeline_mode<synchronous>, transform_indices = @transform_4, window_bounds = array<i64: 390, 200>}, {pipeline_mode = #tpu.pipeline_mode<synchronous>, transform_indices = @transform_5, window_bounds = array<i64: 1, 100>}, {pipeline_mode = #tpu.pipeline_mode<synchronous>, transform_indices = @transform_6, window_bounds = array<i64: 300, 90>}, {pipeline_mode = #tpu.pipeline_mode<synchronous>, transform_indices = @transform_7, window_bounds = array<i64: 1, 90>}, {pipeline_mode = #tpu.pipeline_mode<synchronous>, transform_indices = @transform_8, window_bounds = array<i64: 270, 270>}, {pipeline_mode = #tpu.pipeline_mode<synchronous>, transform_indices = @transform_9, window_bounds = array<i64: 1, 270>}, {pipeline_mode = #tpu.pipeline_mode<synchronous>, transform_indices = @transform_10, window_bounds = array<i64: 270, 128>}, {pipeline_mode = #tpu.pipeline_mode<synchronous>, transform_indices = @transform_11, window_bounds = array<i64: 1, 128>}, {transform_indices = @transform_12, window_bounds = array<i64: 8, 128>}]} {
    %c0 = arith.constant 0 : index
    %c0_0 = arith.constant 0 : index
    %c0_1 = arith.constant 0 : index
    %0 = vector.load %arg1[%c0, %c0_0, %c0_1] : memref<28x8x28xbf16, #tpu.memory_space<vmem>>, vector<28x8x28xbf16>
    %1 = vector.shape_cast %0 : vector<28x8x28xbf16> to vector<224x28xbf16>
    %2 = vector.extract_strided_slice %1 {offsets = [0, 0], sizes = [208, 28], strides = [1, 1]} : vector<224x28xbf16> to vector<208x28xbf16>
    %3 = vector.extract_strided_slice %1 {offsets = [8, 0], sizes = [208, 28], strides = [1, 1]} : vector<224x28xbf16> to vector<208x28xbf16>
    %4 = vector.extract_strided_slice %1 {offsets = [16, 0], sizes = [208, 28], strides = [1, 1]} : vector<224x28xbf16> to vector<208x28xbf16>
    %5 = tpu.concatenate %2, %3, %4 in 1 : vector<208x28xbf16>, vector<208x28xbf16>, vector<208x28xbf16> -> vector<208x84xbf16>
    %c0_2 = arith.constant 0 : index
    %c0_3 = arith.constant 0 : index
    %6 = vector.load %arg2[%c0_2, %c0_3] : memref<84x130xbf16, #tpu.memory_space<vmem>>, vector<84x130xbf16>
    %cst = arith.constant dense<0.000000e+00> : vector<208x130xf32>
    %7 = tpu.matmul %5, %6, %cst {dimension_numbers = #tpu.dot_dimension_numbers<[1], [0], [0], [1], [0, 0, 1, 1], [], []>} : vector<208x84xbf16>, vector<84x130xbf16>, vector<208x130xf32> -> vector<208x130xf32>
    %c0_4 = arith.constant 0 : index
    %c0_5 = arith.constant 0 : index
    %8 = vector.load %arg3[%c0_4, %c0_5] : memref<84x130xbf16, #tpu.memory_space<vmem>>, vector<84x130xbf16>
    %cst_6 = arith.constant dense<0.000000e+00> : vector<208x130xf32>
    %9 = tpu.matmul %5, %8, %cst_6 {dimension_numbers = #tpu.dot_dimension_numbers<[1], [0], [0], [1], [0, 0, 1, 1], [], []>} : vector<208x84xbf16>, vector<84x130xbf16>, vector<208x130xf32> -> vector<208x130xf32>
    %10 = arith.maximumf %7, %9 : vector<208x130xf32>
    %c0_7 = arith.constant 0 : index
    %c0_8 = arith.constant 0 : index
    %11 = vector.load %arg4[%c0_7, %c0_8] : memref<1x130xf32, #tpu.memory_space<vmem>>, vector<1x130xf32>
    %12 = vector.broadcast %11 : vector<1x130xf32> to vector<208x130xf32>
    %13 = arith.addf %10, %12 : vector<208x130xf32>
    %cst_9 = arith.constant 0.000000e+00 : f32
    %14 = vector.broadcast %cst_9 : f32 to vector<208x130xf32>
    %15 = arith.maximumf %13, %14 : vector<208x130xf32>
    %16 = vector.shape_cast %15 : vector<208x130xf32> to vector<13x2x8x130xf32>
    %17 = vector.extract_strided_slice %16 {offsets = [0, 0, 0, 0], sizes = [13, 1, 8, 130], strides = [1, 1, 1, 1]} : vector<13x2x8x130xf32> to vector<13x1x8x130xf32>
    %18 = vector.shape_cast %17 : vector<13x1x8x130xf32> to vector<13x8x130xf32>
    %19 = vector.extract_strided_slice %16 {offsets = [0, 1, 0, 0], sizes = [13, 1, 8, 130], strides = [1, 1, 1, 1]} : vector<13x2x8x130xf32> to vector<13x1x8x130xf32>
    %20 = vector.shape_cast %19 : vector<13x1x8x130xf32> to vector<13x8x130xf32>
    %21 = arith.maximumf %18, %20 : vector<13x8x130xf32>
    %22 = vector.shape_cast %21 : vector<13x8x130xf32> to vector<104x130xf32>
    %23 = arith.truncf %22 : vector<104x130xf32> to vector<104x130xbf16>
    %24 = vector.extract_strided_slice %23 {offsets = [0, 0], sizes = [88, 130], strides = [1, 1]} : vector<104x130xbf16> to vector<88x130xbf16>
    %25 = vector.extract_strided_slice %23 {offsets = [8, 0], sizes = [88, 130], strides = [1, 1]} : vector<104x130xbf16> to vector<88x130xbf16>
    %26 = vector.extract_strided_slice %23 {offsets = [16, 0], sizes = [88, 130], strides = [1, 1]} : vector<104x130xbf16> to vector<88x130xbf16>
    %27 = tpu.concatenate %24, %25, %26 in 1 : vector<88x130xbf16>, vector<88x130xbf16>, vector<88x130xbf16> -> vector<88x390xbf16>
    %c0_10 = arith.constant 0 : index
    %c0_11 = arith.constant 0 : index
    %28 = vector.load %arg5[%c0_10, %c0_11] : memref<390x200xbf16, #tpu.memory_space<vmem>>, vector<390x200xbf16>
    %cst_12 = arith.constant dense<0.000000e+00> : vector<88x200xf32>
    %29 = tpu.matmul %27, %28, %cst_12 {dimension_numbers = #tpu.dot_dimension_numbers<[1], [0], [0], [1], [0, 0, 1, 1], [], []>} : vector<88x390xbf16>, vector<390x200xbf16>, vector<88x200xf32> -> vector<88x200xf32>
    %30 = vector.extract_strided_slice %29 {offsets = [0, 0], sizes = [88, 100], strides = [1, 1]} : vector<88x200xf32> to vector<88x100xf32>
    %31 = vector.extract_strided_slice %29 {offsets = [0, 100], sizes = [88, 100], strides = [1, 1]} : vector<88x200xf32> to vector<88x100xf32>
    %32 = arith.maximumf %30, %31 : vector<88x100xf32>
    %c0_13 = arith.constant 0 : index
    %c0_14 = arith.constant 0 : index
    %33 = vector.load %arg6[%c0_13, %c0_14] : memref<1x100xf32, #tpu.memory_space<vmem>>, vector<1x100xf32>
    %34 = vector.broadcast %33 : vector<1x100xf32> to vector<88x100xf32>
    %35 = arith.addf %32, %34 : vector<88x100xf32>
    %cst_15 = arith.constant 0.000000e+00 : f32
    %36 = vector.broadcast %cst_15 : f32 to vector<88x100xf32>
    %37 = arith.maximumf %35, %36 : vector<88x100xf32>
    %38 = vector.extract_strided_slice %37 {offsets = [0, 0], sizes = [80, 100], strides = [1, 1]} : vector<88x100xf32> to vector<80x100xf32>
    %39 = vector.shape_cast %38 : vector<80x100xf32> to vector<5x2x8x100xf32>
    %40 = vector.extract_strided_slice %39 {offsets = [0, 0, 0, 0], sizes = [5, 1, 8, 100], strides = [1, 1, 1, 1]} : vector<5x2x8x100xf32> to vector<5x1x8x100xf32>
    %41 = vector.shape_cast %40 : vector<5x1x8x100xf32> to vector<5x8x100xf32>
    %42 = vector.extract_strided_slice %39 {offsets = [0, 1, 0, 0], sizes = [5, 1, 8, 100], strides = [1, 1, 1, 1]} : vector<5x2x8x100xf32> to vector<5x1x8x100xf32>
    %43 = vector.shape_cast %42 : vector<5x1x8x100xf32> to vector<5x8x100xf32>
    %44 = arith.maximumf %41, %43 : vector<5x8x100xf32>
    %45 = vector.shape_cast %44 : vector<5x8x100xf32> to vector<40x100xf32>
    %46 = arith.truncf %45 : vector<40x100xf32> to vector<40x100xbf16>
    %47 = vector.extract_strided_slice %46 {offsets = [0, 0], sizes = [24, 100], strides = [1, 1]} : vector<40x100xbf16> to vector<24x100xbf16>
    %48 = vector.extract_strided_slice %46 {offsets = [8, 0], sizes = [24, 100], strides = [1, 1]} : vector<40x100xbf16> to vector<24x100xbf16>
    %49 = vector.extract_strided_slice %46 {offsets = [16, 0], sizes = [24, 100], strides = [1, 1]} : vector<40x100xbf16> to vector<24x100xbf16>
    %50 = tpu.concatenate %47, %48, %49 in 1 : vector<24x100xbf16>, vector<24x100xbf16>, vector<24x100xbf16> -> vector<24x300xbf16>
    %c0_16 = arith.constant 0 : index
    %c0_17 = arith.constant 0 : index
    %51 = vector.load %arg7[%c0_16, %c0_17] : memref<300x90xbf16, #tpu.memory_space<vmem>>, vector<300x90xbf16>
    %cst_18 = arith.constant dense<0.000000e+00> : vector<24x90xf32>
    %52 = tpu.matmul %50, %51, %cst_18 {dimension_numbers = #tpu.dot_dimension_numbers<[1], [0], [0], [1], [0, 0, 1, 1], [], []>} : vector<24x300xbf16>, vector<300x90xbf16>, vector<24x90xf32> -> vector<24x90xf32>
    %c0_19 = arith.constant 0 : index
    %c0_20 = arith.constant 0 : index
    %53 = vector.load %arg8[%c0_19, %c0_20] : memref<1x90xf32, #tpu.memory_space<vmem>>, vector<1x90xf32>
    %54 = vector.broadcast %53 : vector<1x90xf32> to vector<24x90xf32>
    %55 = arith.addf %52, %54 : vector<24x90xf32>
    %cst_21 = arith.constant 0.000000e+00 : f32
    %56 = vector.broadcast %cst_21 : f32 to vector<24x90xf32>
    %57 = arith.maximumf %55, %56 : vector<24x90xf32>
    %58 = arith.truncf %57 : vector<24x90xf32> to vector<24x90xbf16>
    %59 = vector.extract_strided_slice %58 {offsets = [0, 0], sizes = [8, 90], strides = [1, 1]} : vector<24x90xbf16> to vector<8x90xbf16>
    %60 = vector.extract_strided_slice %58 {offsets = [8, 0], sizes = [8, 90], strides = [1, 1]} : vector<24x90xbf16> to vector<8x90xbf16>
    %61 = vector.extract_strided_slice %58 {offsets = [16, 0], sizes = [8, 90], strides = [1, 1]} : vector<24x90xbf16> to vector<8x90xbf16>
    %62 = tpu.concatenate %59, %60, %61 in 1 : vector<8x90xbf16>, vector<8x90xbf16>, vector<8x90xbf16> -> vector<8x270xbf16>
    %c0_22 = arith.constant 0 : index
    %c0_23 = arith.constant 0 : index
    %63 = vector.load %arg9[%c0_22, %c0_23] : memref<270x270xbf16, #tpu.memory_space<vmem>>, vector<270x270xbf16>
    %cst_24 = arith.constant dense<0.000000e+00> : vector<8x270xf32>
    %64 = tpu.matmul %62, %63, %cst_24 {dimension_numbers = #tpu.dot_dimension_numbers<[1], [0], [0], [1], [0, 0, 1, 1], [], []>} : vector<8x270xbf16>, vector<270x270xbf16>, vector<8x270xf32> -> vector<8x270xf32>
    %c0_25 = arith.constant 0 : index
    %c0_26 = arith.constant 0 : index
    %65 = vector.load %arg10[%c0_25, %c0_26] : memref<1x270xf32, #tpu.memory_space<vmem>>, vector<1x270xf32>
    %66 = vector.broadcast %65 : vector<1x270xf32> to vector<8x270xf32>
    %67 = arith.addf %64, %66 : vector<8x270xf32>
    %cst_27 = arith.constant 0.000000e+00 : f32
    %68 = vector.broadcast %cst_27 : f32 to vector<8x270xf32>
    %69 = arith.maximumf %67, %68 : vector<8x270xf32>
    %70 = arith.truncf %69 : vector<8x270xf32> to vector<8x270xbf16>
    %c0_28 = arith.constant 0 : index
    %c0_29 = arith.constant 0 : index
    %71 = vector.load %arg11[%c0_28, %c0_29] : memref<270x128xbf16, #tpu.memory_space<vmem>>, vector<270x128xbf16>
    %cst_30 = arith.constant dense<0.000000e+00> : vector<8x128xf32>
    %72 = tpu.matmul %70, %71, %cst_30 {dimension_numbers = #tpu.dot_dimension_numbers<[1], [0], [0], [1], [0, 0, 1, 1], [], []>} : vector<8x270xbf16>, vector<270x128xbf16>, vector<8x128xf32> -> vector<8x128xf32>
    %c0_31 = arith.constant 0 : index
    %c0_32 = arith.constant 0 : index
    %73 = vector.load %arg12[%c0_31, %c0_32] : memref<1x128xf32, #tpu.memory_space<vmem>>, vector<1x128xf32>
    %74 = vector.broadcast %73 : vector<1x128xf32> to vector<8x128xf32>
    %75 = arith.addf %72, %74 : vector<8x128xf32>
    %cst_33 = arith.constant dense<0xFF800000> : vector<8xf32>
    %76 = vector.multi_reduction <maximumf>, %75, %cst_33 [1] : vector<8x128xf32> to vector<8xf32>
    %77 = vector.shape_cast %76 : vector<8xf32> to vector<8x1xf32>
    %78 = vector.broadcast %77 : vector<8x1xf32> to vector<8x128xf32>
    %79 = arith.subf %75, %78 : vector<8x128xf32>
    %80 = math.exp %79 : vector<8x128xf32>
    %cst_34 = arith.constant dense<0.000000e+00> : vector<8xf32>
    %81 = vector.multi_reduction <add>, %80, %cst_34 [1] : vector<8x128xf32> to vector<8xf32>
    %82 = vector.shape_cast %81 : vector<8xf32> to vector<8x1xf32>
    %83 = math.log %82 : vector<8x1xf32>
    %84 = arith.addf %83, %77 : vector<8x1xf32>
    %85 = vector.broadcast %84 : vector<8x1xf32> to vector<8x128xf32>
    %86 = arith.subf %75, %85 : vector<8x128xf32>
    %c0_35 = arith.constant 0 : index
    %c0_36 = arith.constant 0 : index
    %87 = vector.load %arg13[%c0_35, %c0_36] : memref<8x128xf32, #tpu.memory_space<vmem>>, vector<8x128xf32>
    tpu.vector_store %arg13[%c0_35, %c0_36], %86 {strides = array<i32>} : memref<8x128xf32, #tpu.memory_space<vmem>>, vector<8x128xf32>,
    return
  }
  func.func @transform_0(%arg0: i32) -> (i32, i32, i32) {
    %c0_i32 = arith.constant 0 : i32
    %c0_i32_0 = arith.constant 0 : i32
    %c0_i32_1 = arith.constant 0 : i32
    return %c0_i32, %arg0, %c0_i32_0 : i32, i32, i32
  }
  func.func @transform_1(%arg0: i32) -> (i32, i32) {
    %c0_i32 = arith.constant 0 : i32
    %c0_i32_0 = arith.constant 0 : i32
    %c0_i32_1 = arith.constant 0 : i32
    return %c0_i32, %c0_i32_0 : i32, i32
  }
  func.func @transform_2(%arg0: i32) -> (i32, i32) {
    %c0_i32 = arith.constant 0 : i32
    %c0_i32_0 = arith.constant 0 : i32
    %c0_i32_1 = arith.constant 0 : i32
    return %c0_i32, %c0_i32_0 : i32, i32
  }
  func.func @transform_3(%arg0: i32) -> (i32, i32) {
    %c0_i32 = arith.constant 0 : i32
    %c0_i32_0 = arith.constant 0 : i32
    %c0_i32_1 = arith.constant 0 : i32
    return %c0_i32, %c0_i32_0 : i32, i32
  }
  func.func @transform_4(%arg0: i32) -> (i32, i32) {
    %c0_i32 = arith.constant 0 : i32
    %c0_i32_0 = arith.constant 0 : i32
    %c0_i32_1 = arith.constant 0 : i32
    return %c0_i32, %c0_i32_0 : i32, i32
  }
  func.func @transform_5(%arg0: i32) -> (i32, i32) {
    %c0_i32 = arith.constant 0 : i32
    %c0_i32_0 = arith.constant 0 : i32
    %c0_i32_1 = arith.constant 0 : i32
    return %c0_i32, %c0_i32_0 : i32, i32
  }
  func.func @transform_6(%arg0: i32) -> (i32, i32) {
    %c0_i32 = arith.constant 0 : i32
    %c0_i32_0 = arith.constant 0 : i32
    %c0_i32_1 = arith.constant 0 : i32
    return %c0_i32, %c0_i32_0 : i32, i32
  }
  func.func @transform_7(%arg0: i32) -> (i32, i32) {
    %c0_i32 = arith.constant 0 : i32
    %c0_i32_0 = arith.constant 0 : i32
    %c0_i32_1 = arith.constant 0 : i32
    return %c0_i32, %c0_i32_0 : i32, i32
  }
  func.func @transform_8(%arg0: i32) -> (i32, i32) {
    %c0_i32 = arith.constant 0 : i32
    %c0_i32_0 = arith.constant 0 : i32
    %c0_i32_1 = arith.constant 0 : i32
    return %c0_i32, %c0_i32_0 : i32, i32
  }
  func.func @transform_9(%arg0: i32) -> (i32, i32) {
    %c0_i32 = arith.constant 0 : i32
    %c0_i32_0 = arith.constant 0 : i32
    %c0_i32_1 = arith.constant 0 : i32
    return %c0_i32, %c0_i32_0 : i32, i32
  }
  func.func @transform_10(%arg0: i32) -> (i32, i32) {
    %c0_i32 = arith.constant 0 : i32
    %c0_i32_0 = arith.constant 0 : i32
    %c0_i32_1 = arith.constant 0 : i32
    return %c0_i32, %c0_i32_0 : i32, i32
  }
  func.func @transform_11(%arg0: i32) -> (i32, i32) {
    %c0_i32 = arith.constant 0 : i32
    %c0_i32_0 = arith.constant 0 : i32
    %c0_i32_1 = arith.constant 0 : i32
    return %c0_i32, %c0_i32_0 : i32, i32
  }
  func.func @transform_12(%arg0: i32) -> (i32, i32) {
    %c0_i32 = arith.constant 0 : i32
    %c0_i32_0 = arith.constant 0 : i32
    return %arg0, %c0_i32 : i32, i32
  }
}

</mosaic_0001>

<bundles_post_ra>
// kernel: mycnn_forward.1
= control target key start
LH: loop header
LB: loop body
LE: loop exit
PB: predicated region body
PF: predicated region fallthrough
CT: control target
= control target key end

     0   :  { %17 = vsyncpa [#allocation3], 0  ;;  %s3895_s24 = smov [#allocation2]   ;;  %s3896_s26 = smov 64   ;;  %s5471_s0 = inlined_call_operand.vmem [shape: bf16[28,8,28], index: 0, kind: input, shape index: {}]   ;;  %s5472_s1 = inlined_call_operand.vmem [shape: bf16[84,130], index: 1, kind: input, shape index: {}]   ;;  %s5473_s2 = inlined_call_operand.vmem [shape: bf16[84,130], index: 2, kind: input, shape index: {}]   ;;  %s5474_s3 = inlined_call_operand.vmem [shape: f32[1,130], index: 3, kind: input, shape index: {}]   ;;  %s5475_s4 = inlined_call_operand.vmem [shape: bf16[390,200], index: 4, kind: input, shape index: {}]   ;;  %s5476_s5 = inlined_call_operand.vmem [shape: f32[1,100], index: 5, kind: input, shape index: {}]   ;;  %s5477_s6 = inlined_call_operand.vmem [shape: bf16[300,90], index: 6, kind: input, shape index: {}]   ;;  %s5478_s7 = inlined_call_operand.vmem [shape: f32[1,90], index: 7, kind: input, shape index: {}]   ;;  %s5479_s8 = inlined_call_operand.vmem [shape: bf16[270,270], index: 8, kind: input, shape index: {}]   ;;  %s5480_s9 = inlined_call_operand.vmem [shape: f32[1,270], index: 9, kind: input, shape index: {}]   ;;  %s5481_s10 = inlined_call_operand.hbm [shape: bf16[270,128], index: 10, kind: input, shape index: {}]   ;;  %s5482_s11 = inlined_call_operand.vmem [shape: f32[1,128], index: 11, kind: input, shape index: {}]   ;;  %s5483_s12 = inlined_call_operand.vmem [shape: f32[8,128], index: 12, kind: output, shape index: {}]  }
   0x1   :  { %s42_s23 = sshll.u32 %s5481_s10, 4  ;;  %s44_s25 = sshll.u32 %s3895_s24, 4  ;;  %s43_s23 = int_to_ptr.hbm [resolvable:$true] %s42_s23  ;;  %s45_s25 = int_to_ptr.vmem [resolvable:$true] %s44_s25 }
   0x2   :  { %s3897_s27 = smov 4  }
   0x3   :  { %50 = dma.hbm_to_vmem [thread:$0]  %s43_s23, 2176, %s45_s25, [#allocation3], %s3896_s26, %s3896_s26, %s3897_s27  }
   0x4   :  { %3893 = dma.done.wait [#allocation3], 2176  }
   0x5   :  { %3894 = vsyncadd [#allocation3], 4294965120  ;;  %v3823_v0 = vld [vmem:[%s5471_s0 + $0x4] sm:$0xff]   ;;  %v3825_v1 = vld [vmem:[%s5471_s0 + $0xc] sm:$0xff]   ;;  %s3898_s15 = smov 28   ;;  %vm381_vm0 = vcmask 1041408  }
   0x6   :  { %v3827_v2 = vld [vmem:[%s5471_s0 + $0x14] sm:$0xff]   ;;  %166 = vrot.lane.b32.xlu0 %v3823_v0, %s3898_s15  ;;  %168 = vrot.lane.b32.xlu1 %v3825_v1, %s3898_s15  ;;  %v3995_v9 = vld [vmem:[%s5471_s0 + $0x8] sm:$0xff]   ;;  %s3899_s21 = smov 56   ;;  %vm221_vm1 = vcmask 228352   ;;  %vm261_vm2 = vcmask 457728   ;;  %vm354_vm3 = vcmask 687104  }
   0x7   :  { %170 = vrot.lane.b32.xlu2 %v3827_v2, %s3898_s15  ;;  %v298_v3 = vld [vmem:[%s5472_s1 + $0x50] sm:$0x33]  ;;  %v4005_v11 = vld [vmem:[%s5471_s0 + $0x18] sm:$0xff]   ;;  %v2881_v16 = vld [vmem:[%s5472_s1 + $0x40] sm:$0xf]  ;;  %vm1455_vm4 = vcmask 1042432  }
   0x8   :  { %v546_v4 = vld [vmem:[%s5473_s2 + $0x50] sm:$0x33]  ;;  %v330_v5 = vunpack.c.l.b16 %v298_v3  ;;  %v331_v6 = vunpack.c.h.b16 %v298_v3  ;;  %v3546_v17 = vld [vmem:[%s5472_s1 + $0x44] sm:$0xf0]  ;;  %v3545_v18 = vld [vmem:[%s5472_s1 + $0x44] sm:$0xf] }
   0x9   :  { %v578_v7 = vunpack.c.l.b16 %v546_v4  ;;  %v579_v8 = vunpack.c.h.b16 %v546_v4  ;;  %v4000_v10 = vld [vmem:[%s5471_s0 + $0x10] sm:$0xff]   ;;  %v2883_v19 = vld [vmem:[%s5472_s1 + $0x48] sm:$0xf0]  ;;  %v2947_v20 = vld [vmem:[%s5473_s2 + $0x40] sm:$0xf]  ;;  %v2882_v28 = vor.u32 %v3546_v17, %v2881_v16  ;;  %s3900_s23 = smov 2  }
   0xa   :  { %v342_v12 = vpack.c.b16 %v330_v5, %v330_v5  ;;  %v343_v13 = vpack.c.b16 %v331_v6, %v331_v6  ;;  %v3556_v24 = vld [vmem:[%s5473_s2 + $0x44] sm:$0xf0]  ;;  %v3555_v26 = vld [vmem:[%s5473_s2 + $0x44] sm:$0xf]  ;;  %v2949_v27 = vld [vmem:[%s5473_s2 + $0x48] sm:$0xf0]  ;;  %v2886_v30 = vor.u32 %v3545_v18, %v2883_v19 }
   0xb   :  { %v590_v14 = vpack.c.b16 %v578_v7, %v578_v7  ;;  %v591_v15 = vpack.c.b16 %v579_v8, %v579_v8  ;;  %v3829_v29 = vld [vmem:[%s5471_s0 + $0x1c] sm:$0xff]   ;;  %v2948_v31 = vor.u32 %v3556_v24, %v2947_v20  ;;  %v2873_v32 = vld [vmem:[%s5472_s1 + $0x30] sm:$0xf]  ;;  %v3544_v33 = vld [vmem:[%s5472_s1 + $0x34] sm:$0xf0]  ;;  %v2952_v36 = vor.u32 %v3555_v26, %v2949_v27  ;;  %s3901_s10 = smov 72  }
   0xc   :  { %v383_v21 = vsel %vm381_vm0, %v342_v12, 0  ;;  %v386_v22 = vsel %vm381_vm0, %v343_v13, 0  ;;  %v3543_v34 = vld [vmem:[%s5472_s1 + $0x34] sm:$0xf]  ;;  %v4056_v35 = vld [vmem:[%s5471_s0 + $0x20] sm:$0xff]   ;;  %v2874_v43 = vor.u32 %v3544_v33, %v2873_v32  ;;  %v3833_v59 = vld [vmem:[%s5471_s0 + $0x2c] sm:$0xff]  }
   0xd   :  { %v603_v23 = vsel %vm381_vm0, %v590_v14, 0  ;;  %v606_v25 = vsel %vm381_vm0, %v591_v15, 0  ;;  %390 = vmatpush.bf16.msra.mxu0 %v383_v21  ;;  %464 = vmatpush.bf16.msra.mxu1 %v386_v22  ;;  %v2875_v37 = vld [vmem:[%s5472_s1 + $0x38] sm:$0xf0]  ;;  %v2939_v38 = vld [vmem:[%s5473_s2 + $0x30] sm:$0xf] }
   0xe   :  { %195 = vrot.lane.b32.xlu0 %v3995_v9, %s3899_s21  ;;  %197 = vrot.lane.b32.xlu1 %v4000_v10, %s3899_s21  ;;  %v3554_v39 = vld [vmem:[%s5473_s2 + $0x34] sm:$0xf0]  ;;  %v3553_v40 = vld [vmem:[%s5473_s2 + $0x34] sm:$0xf]  ;;  %v2878_v44 = vor.u32 %v3543_v34, %v2875_v37  ;;  %vm1047_vm5 = vcmask 15360   ;;  %vm1085_vm6 = vcmask 31744  }
   0xf   :  { %199 = vrot.lane.b32.xlu2 %v4005_v11, %s3899_s21  ;;  %610 = vmatpush.bf16.msra.mxu2 %v603_v23  ;;  %v2941_v41 = vld [vmem:[%s5473_s2 + $0x38] sm:$0xf0]  ;;  %v3831_v42 = vld [vmem:[%s5471_s0 + $0x24] sm:$0xff]   ;;  %v2940_v45 = vor.u32 %v3554_v39, %v2939_v38  ;;  %v2865_v46 = vld [vmem:[%s5472_s1 + $0x20] sm:$0xf]  ;;  %vm1436_vm7 = vcmask 48128  }
  0x10   :  { %684 = vmatpush.bf16.msra.mxu3 %v606_v25  ;;  %v3542_v47 = vld [vmem:[%s5472_s1 + $0x24] sm:$0xf0]  ;;  %v3541_v48 = vld [vmem:[%s5472_s1 + $0x24] sm:$0xf]  ;;  %v2944_v49 = vor.u32 %v3553_v40, %v2941_v41  ;;  %v2867_v50 = vld [vmem:[%s5472_s1 + $0x28] sm:$0xf0] }
  0x11   :  { %391 = vmatpush.bf16.msra.mxu0 %v2882_v28  ;;  %465 = vmatpush.bf16.msra.mxu1 %v2886_v30  ;;  %v2931_v51 = vld [vmem:[%s5473_s2 + $0x20] sm:$0xf]  ;;  %v3552_v52 = vld [vmem:[%s5473_s2 + $0x24] sm:$0xf0]  ;;  %v3551_v53 = vld [vmem:[%s5473_s2 + $0x24] sm:$0xf]  ;;  %v2866_v55 = vor.u32 %v3542_v47, %v2865_v46  ;;  %v2870_v56 = vor.u32 %v3541_v48, %v2867_v50 }
  0x12   :  { %v2933_v54 = vld [vmem:[%s5473_s2 + $0x28] sm:$0xf0]  ;;  %v2932_v57 = vor.u32 %v3552_v52, %v2931_v51  ;;  %v4115_v61 = vld [vmem:[%s5471_s0 + $0x30] sm:$0xff]   ;;  %v4128_v63 = vld [vmem:[%s5471_s0 + $0x38] sm:$0xff]   ;;  %vm2082_vm8 = vcmask 1045504   ;;  %vm1906_vm9 = vcmask 818176  }
  0x13   :  { %611 = vmatpush.bf16.msra.mxu2 %v2948_v31  ;;  %v2936_v58 = vor.u32 %v3551_v53, %v2933_v54  ;;  %v4110_v60 = vld [vmem:[%s5471_s0 + $0x28] sm:$0xff]   ;;  %v3835_v62 = vld [vmem:[%s5471_s0 + $0x34] sm:$0xff]   ;;  %v2857_v0 = vld [vmem:[%s5472_s1 + $0x10] sm:$0xf]  ;;  %vm1915_vm10 = vcmask 588800   ;;  %vm2077_vm11 = vcmask 359424  }
  0x14   :  { %685 = vmatpush.bf16.msra.mxu3 %v2952_v36  ;;  %v3540_v1 = vld [vmem:[%s5472_s1 + $0x14] sm:$0xf0]  ;;  %v3539_v3 = vld [vmem:[%s5472_s1 + $0x14] sm:$0xf]  ;;  %v2859_v4 = vld [vmem:[%s5472_s1 + $0x18] sm:$0xf0] }
  0x15   :  { %392 = vmatpush.bf16.msra.mxu0 %v2874_v43  ;;  %466 = vmatpush.bf16.msra.mxu1 %v2878_v44  ;;  %v2858_v2 = vor.u32 %v3540_v1, %v2857_v0  ;;  %v2923_v5 = vld [vmem:[%s5473_s2 + $0x10] sm:$0xf]  ;;  %v2862_v6 = vor.u32 %v3539_v3, %v2859_v4  ;;  %v3550_v7 = vld [vmem:[%s5473_s2 + $0x14] sm:$0xf0]  ;;  %v3549_v8 = vld [vmem:[%s5473_s2 + $0x14] sm:$0xf] }
  0x16   :  { %172 = vrot.lane.b32.xlu0 %v3829_v29, %s3898_s15  ;;  %201 = vrot.lane.b32.xlu1 %v4056_v35, %s3899_s21  ;;  %v2925_v12 = vld [vmem:[%s5473_s2 + $0x18] sm:$0xf0]  ;;  %v2924_v13 = vor.u32 %v3550_v7, %v2923_v5  ;;  %v4160_v15 = vld [vmem:[%s5471_s0 + $0x40] sm:$0xff]   ;;  %s3903_s26 = smov 90   ;;  %vm2513_vm12 = vcmask 1046528   ;;  %vm2156_vm13 = vcmask 736256  }
  0x17   :  { %174 = vrot.lane.b32.xlu2 %v3831_v42, %s3898_s15  ;;  %612 = vmatpush.bf16.msra.mxu2 %v2940_v45  ;;  %v2928_v14 = vor.u32 %v3549_v8, %v2925_v12  ;;  %v2849_v16 = vld [vmem:[%s5472_s1] sm:$0xf]  ;;  %v3538_v17 = vld [vmem:[%s5472_s1 + $0x4] sm:$0xf0]  ;;  %v3537_v19 = vld [vmem:[%s5472_s1 + $0x4] sm:$0xf] }
  0x18   :  { %686 = vmatpush.bf16.msra.mxu3 %v2944_v49  ;;  %v2850_v18 = vor.u32 %v3538_v17, %v2849_v16  ;;  %v2851_v20 = vld [vmem:[%s5472_s1 + $0x8] sm:$0xf0]  ;;  %v2915_v21 = vld [vmem:[%s5473_s2] sm:$0xf]  ;;  %v3548_v23 = vld [vmem:[%s5473_s2 + $0x4] sm:$0xf0] }
  0x19   :  { %393 = vmatpush.bf16.msra.mxu0 %v2866_v55  ;;  %467 = vmatpush.bf16.msra.mxu1 %v2870_v56  ;;  %v2854_v22 = vor.u32 %v3537_v19, %v2851_v20  ;;  %v3547_v24 = vld [vmem:[%s5473_s2 + $0x4] sm:$0xf]  ;;  %v2917_v25 = vld [vmem:[%s5473_s2 + $0x8] sm:$0xf0]  ;;  %v2916_v26 = vor.u32 %v3548_v23, %v2915_v21  ;;  %v3837_v29 = vld [vmem:[%s5471_s0 + $0x3c] sm:$0xff]   ;;  %vm2161_vm14 = vcmask 424960  }
  0x1a   :  { %v2920_v27 = vor.u32 %v3547_v24, %v2917_v25  ;;  %v3839_v28 = vld [vmem:[%s5471_s0 + $0x44] sm:$0xff]   ;;  %v3841_v30 = vld [vmem:[%s5471_s0 + $0x4c] sm:$0xff]   ;;  %v4224_v39 = vld [vmem:[%s5471_s0 + $0x58] sm:$0xff]   ;;  %vm2510_vm15 = vcmask 113664  }
  0x1b   :  { %613 = vmatpush.bf16.msra.mxu2 %v2932_v57  ;;  %v4201_v31 = vld [vmem:[%s5471_s0 + $0x50] sm:$0xff]   ;;  %v3693_v33 = vld [vmem:[%s5471_s0] sm:$0xff]   ;;  %v4219_v38 = vld [vmem:[%s5471_s0 + $0x48] sm:$0xff]  }
  0x1c   :  { %687 = vmatpush.bf16.msra.mxu3 %v2936_v58  ;;  %v3844_v44 = vld [vmem:[%s5471_s0 + $0x5c] sm:$0xff]   ;;  %v3843_v48 = vld [vmem:[%s5471_s0 + $0x54] sm:$0xff]   ;;  %v3851_v49 = vld [vmem:[%s5471_s0 + $0x64] sm:$0xff]  }
  0x1d   :  { %394 = vmatpush.bf16.msra.mxu0 %v2858_v2  ;;  %468 = vmatpush.bf16.msra.mxu1 %v2862_v6  ;;  %v4270_v54 = vld [vmem:[%s5471_s0 + $0x60] sm:$0xff]  }
  0x1e   :  { %203 = vrot.lane.b32.xlu0 %v4110_v60, %s3899_s21  ;;  %176 = vrot.lane.b32.xlu1 %v3833_v59, %s3898_s15 }
  0x1f   :  { %205 = vrot.lane.b32.xlu2 %v4115_v61, %s3899_s21  ;;  %614 = vmatpush.bf16.msra.mxu2 %v2924_v13 }
  0x20   :  { %688 = vmatpush.bf16.msra.mxu3 %v2928_v14 }
  0x21   :  { %395 = vmatpush.bf16.msra.mxu0 %v2850_v18  ;;  %469 = vmatpush.bf16.msra.mxu1 %v2854_v22 }
  0x23   :  { %615 = vmatpush.bf16.msra.mxu2 %v2916_v26  ;;  %v808_v26 = vld [vmem:[%s5474_s3] sm:$0x3] }
  0x24   :  { %689 = vmatpush.bf16.msra.mxu3 %v2920_v27  ;;  %v3037_v27 = vld [vmem:[%s5475_s4 + $0x70] sm:$0xf] }
  0x26   :  { %178 = vrot.lane.b32.xlu0 %v3835_v62, %s3898_s15  ;;  %207 = vrot.lane.b32.xlu1 %v4128_v63, %s3899_s21 }
  0x27   :  { %180 = vrot.lane.b32.xlu2 %v3837_v29, %s3898_s15 }
  0x2e   :  { %209 = vrot.lane.b32.xlu0 %v4160_v15, %s3899_s21  ;;  %182 = vrot.lane.b32.xlu1 %v3839_v28, %s3898_s15  ;;  %v3572_v28 = vld [vmem:[%s5475_s4 + $0x74] sm:$0xf0] }
  0x2f   :  { %211 = vrot.lane.b32.xlu2 %v4219_v38, %s3899_s21  ;;  %v3038_v29 = vor.u32 %v3572_v28, %v3037_v27  ;;  %v3564_v27 = vld [vmem:[%s5475_s4 + $0x34] sm:$0xf0] }
  0x31   :  { %1462 = vmatpush.bf16.msrb.mxu0 %v3038_v29 }
  0x36   :  { %213 = vrot.lane.b32.xlu1 %v4201_v31, %s3899_s21  ;;  %184 = vrot.lane.b32.xlu0 %v3841_v30, %s3898_s15  ;;  %v4329_v30 = vperm.slane %v808_v26, 0 }
  0x37   :  { %186 = vrot.lane.b32.xlu2 %v3843_v48, %s3898_s15 }
  0x3e   :  { %215 = vrot.lane.b32.xlu0 %v4224_v39, %s3899_s21  ;;  %188 = vrot.lane.b32.xlu1 %v3844_v44, %s3898_s15 }
  0x3f   :  { %217 = vrot.lane.b32.xlu2 %v4270_v54, %s3899_s21 }
  0x46   :  { %190 = vrot.lane.b32.xlu0 %v3851_v49, %s3898_s15 }
  0x61   :  { %v171_v45 = vpop.permute.xlu2 %170 }
  0x69   :  { %v200_v46 = vpop.permute.xlu2 %199 }
  0x78   :  { %v167_v32 = vpop.permute.xlu0 %166  ;;  %v169_v40 = vpop.permute.xlu1 %168 }
  0x79   :  { %v224_v34 = vsel %vm221_vm1, %v3693_v33, %v167_v32  ;;  %v227_v41 = vsel %vm221_vm1, %v3995_v9, %v169_v40  ;;  %v230_v9 = vsel %vm221_vm1, %v4000_v10, %v171_v45  ;;  %v3760_v10 = vld [vmem:[%s5471_s0 + $0x68] sm:$0xff]   ;;  %v4331_v32 = vperm.slane %v808_v26, 1  ;;  %v1190_v40 = vld [vmem:[%s5475_s4 + $0x180] sm:$0x77]  ;;  %v3005_v26 = vld [vmem:[%s5475_s4 + $0x30] sm:$0xf] }
  0x7a   :  { %v267_v47 = vsel %vm261_vm2, %v230_v9, %v200_v46  ;;  %219 = vrot.lane.b32.xlu1 %v3760_v10, %s3899_s21  ;;  %v1336_v45 = vunpack.c.l.b16 %v1190_v40  ;;  %v1337_v9 = vunpack.c.h.b16 %v1190_v40  ;;  %v3101_v46 = vld [vmem:[%s5475_s4 + $0xf0] sm:$0xf] }
  0x80   :  { %v196_v36 = vpop.permute.xlu0 %195  ;;  %v198_v42 = vpop.permute.xlu1 %197 }
  0x81   :  { %v263_v37 = vsel %vm261_vm2, %v224_v34, %v196_v36  ;;  %v265_v43 = vsel %vm261_vm2, %v227_v41, %v198_v42 }
  0x82   :  { %2887 = vmatmul.msk.bf16.vlgmr.msra.gmra.mxu0 %vm354_vm3, %v263_v37  ;;  %2900 = vmatmul.msk.bf16.vlgmr.msra.gmra.mxu1 %vm354_vm3, %v263_v37 }
  0x83   :  { %2953 = vmatmul.msk.bf16.vlgmr.msra.gmra.mxu2 %vm354_vm3, %v263_v37  ;;  %2966 = vmatmul.msk.bf16.vlgmr.msra.gmra.mxu3 %vm354_vm3, %v263_v37  ;;  %v3165_v37 = vld [vmem:[%s5475_s4 + $0x170] sm:$0xf] }
  0x88   :  { %v173_v50 = vpop.permute.xlu0 %172  ;;  %v202_v52 = vpop.permute.xlu1 %201 }
  0x89   :  { %v233_v51 = vsel %vm221_vm1, %v4005_v11, %v173_v50  ;;  %v175_v11 = vpop.permute.xlu2 %174  ;;  %v3029_v50 = vld [vmem:[%s5475_s4 + $0x60] sm:$0xf] }
  0x8a   :  { %v269_v53 = vsel %vm261_vm2, %v233_v51, %v202_v52  ;;  %v236_v55 = vsel %vm221_vm1, %v4056_v35, %v175_v11  ;;  %v3570_v51 = vld [vmem:[%s5475_s4 + $0x64] sm:$0xf0]  ;;  %v1387_v11 = vpack.c.b16 %v1337_v9, %v1337_v9 }
  0x90   :  { %v204_v56 = vpop.permute.xlu0 %203  ;;  %v177_v58 = vpop.permute.xlu1 %176 }
  0x91   :  { %v271_v57 = vsel %vm261_vm2, %v236_v55, %v204_v56  ;;  %v239_v59 = vsel %vm221_vm1, %v4110_v60, %v177_v58  ;;  %v206_v62 = vpop.permute.xlu2 %205  ;;  %v3030_v55 = vor.u32 %v3570_v51, %v3029_v50  ;;  %v3560_v50 = vld [vmem:[%s5475_s4 + $0x14] sm:$0xf0] }
  0x92   :  { %2888 = vmatmul.msk.bf16.gmra.mxu0 %vm354_vm3, %v265_v43  ;;  %2901 = vmatmul.msk.bf16.gmra.mxu1 %vm354_vm3, %v265_v43  ;;  %v273_v0 = vsel %vm261_vm2, %v239_v59, %v206_v62  ;;  %v3021_v59 = vld [vmem:[%s5475_s4 + $0x50] sm:$0xf]  ;;  %v3568_v62 = vld [vmem:[%s5475_s4 + $0x54] sm:$0xf0] }
  0x93   :  { %2954 = vmatmul.msk.bf16.gmra.mxu2 %vm354_vm3, %v265_v43  ;;  %2967 = vmatmul.msk.bf16.gmra.mxu3 %vm354_vm3, %v265_v43 }
  0x94   :  { %1463 = vmatpush.bf16.msrb.mxu0 %v3030_v55 }
  0x98   :  { %v179_v35 = vpop.permute.xlu0 %178  ;;  %v208_v2 = vpop.permute.xlu1 %207 }
  0x99   :  { %v242_v1 = vsel %vm221_vm1, %v4115_v61, %v179_v35  ;;  %v181_v60 = vpop.permute.xlu2 %180 }
  0x9a   :  { %v275_v3 = vsel %vm261_vm2, %v242_v1, %v208_v2  ;;  %v245_v4 = vsel %vm221_vm1, %v4128_v63, %v181_v60  ;;  %v1460_v1 = vsel %vm1455_vm4, %v1387_v11, 0  ;;  %v3022_v2 = vor.u32 %v3568_v62, %v3021_v59 }
  0x9c   :  { %1464 = vmatpush.bf16.msrb.mxu0 %v3022_v2 }
  0xa0   :  { %v210_v5 = vpop.permute.xlu0 %209  ;;  %v183_v61 = vpop.permute.xlu1 %182 }
  0xa1   :  { %v277_v6 = vsel %vm261_vm2, %v245_v4, %v210_v5  ;;  %v248_v7 = vsel %vm221_vm1, %v4160_v15, %v183_v61  ;;  %v212_v8 = vpop.permute.xlu2 %211 }
  0xa2   :  { %2889 = vmatmul.msk.bf16.gmra.mxu0 %vm354_vm3, %v267_v47  ;;  %2902 = vmatmul.msk.bf16.gmra.mxu1 %vm354_vm3, %v267_v47  ;;  %v279_v63 = vsel %vm261_vm2, %v248_v7, %v212_v8  ;;  %v3013_v7 = vld [vmem:[%s5475_s4 + $0x40] sm:$0xf]  ;;  %v3566_v8 = vld [vmem:[%s5475_s4 + $0x44] sm:$0xf0] }
  0xa3   :  { %2955 = vmatmul.msk.bf16.gmra.mxu2 %vm354_vm3, %v267_v47  ;;  %2968 = vmatmul.msk.bf16.gmra.mxu3 %vm354_vm3, %v267_v47  ;;  %v3588_v47 = vld [vmem:[%s5475_s4 + $0xf4] sm:$0xf0] }
  0xa4   :  { %v3102_v10 = vor.u32 %v3588_v47, %v3101_v46 }
  0xa6   :  { %1499 = vmatpush.bf16.msrb.mxu1 %v3102_v10  ;;  %v2989_v10 = vld [vmem:[%s5475_s4 + $0x10] sm:$0xf] }
  0xa7   :  { %v2990_v62 = vor.u32 %v3560_v50, %v2989_v10 }
  0xa8   :  { %v185_v19 = vpop.permute.xlu0 %184  ;;  %v214_v20 = vpop.permute.xlu1 %213 }
  0xa9   :  { %v251_v15 = vsel %vm221_vm1, %v4219_v38, %v185_v19  ;;  %v3604_v38 = vld [vmem:[%s5475_s4 + $0x174] sm:$0xf0]  ;;  %v187_v52 = vpop.permute.xlu2 %186 }
  0xaa   :  { %v281_v25 = vsel %vm261_vm2, %v251_v15, %v214_v20  ;;  %v3166_v44 = vor.u32 %v3604_v38, %v3165_v37  ;;  %v254_v4 = vsel %vm221_vm1, %v4201_v31, %v187_v52 }
  0xac   :  { %1536 = vmatpush.bf16.msrb.mxu2 %v3166_v44 }
  0xb0   :  { %v216_v5 = vpop.permute.xlu0 %215  ;;  %v189_v47 = vpop.permute.xlu1 %188 }
  0xb1   :  { %v257_v11 = vsel %vm221_vm1, %v4224_v39, %v189_v47  ;;  %v218_v55 = vpop.permute.xlu2 %217  ;;  %v3558_v39 = vld [vmem:[%s5475_s4 + $0x4] sm:$0xf0] }
  0xb2   :  { %2890 = vmatmul.msk.bf16.gmra.mxu0 %vm354_vm3, %v269_v53  ;;  %2903 = vmatmul.msk.bf16.gmra.mxu1 %vm354_vm3, %v269_v53  ;;  %v285_v2 = vsel %vm261_vm2, %v257_v11, %v218_v55  ;;  %v3149_v55 = vld [vmem:[%s5475_s4 + $0x150] sm:$0xf] }
  0xb3   :  { %2956 = vmatmul.msk.bf16.gmra.mxu2 %vm354_vm3, %v269_v53  ;;  %2969 = vmatmul.msk.bf16.gmra.mxu3 %vm354_vm3, %v269_v53  ;;  %v1386_v53 = vpack.c.b16 %v1336_v45, %v1336_v45 }
  0xb5   :  { %v1457_v35 = vsel %vm1455_vm4, %v1386_v53, 0 }
  0xb6   :  { %1580 = vmatpush.bf16.msrb.mxu3 %v1457_v35 }
  0xba   :  { %1728 = vmatpush.bf16.msra.mxu3 %v1460_v1 }
  0xc2   :  { %2891 = vmatmul.msk.bf16.gmra.mxu0 %vm354_vm3, %v271_v57  ;;  %2904 = vmatmul.msk.bf16.gmra.mxu1 %vm354_vm3, %v271_v57 }
  0xc3   :  { %2957 = vmatmul.msk.bf16.gmra.mxu2 %vm354_vm3, %v271_v57  ;;  %2970 = vmatmul.msk.bf16.gmra.mxu3 %vm354_vm3, %v271_v57 }
  0xd2   :  { %2892 = vmatmul.msk.bf16.gmra.mxu0 %vm354_vm3, %v273_v0  ;;  %2905 = vmatmul.msk.bf16.gmra.mxu1 %vm354_vm3, %v273_v0 }
  0xd3   :  { %2958 = vmatmul.msk.bf16.gmra.mxu2 %vm354_vm3, %v273_v0  ;;  %2971 = vmatmul.msk.bf16.gmra.mxu3 %vm354_vm3, %v273_v0 }
  0xe2   :  { %2893 = vmatmul.msk.bf16.gmra.mxu0 %vm354_vm3, %v275_v3  ;;  %2906 = vmatmul.msk.bf16.gmra.mxu1 %vm354_vm3, %v275_v3 }
  0xe3   :  { %2959 = vmatmul.msk.bf16.gmra.mxu2 %vm354_vm3, %v275_v3  ;;  %2972 = vmatmul.msk.bf16.gmra.mxu3 %vm354_vm3, %v275_v3 }
  0xf2   :  { %2894 = vmatmul.msk.bf16.gmra.mxu0 %vm354_vm3, %v277_v6  ;;  %2907 = vmatmul.msk.bf16.gmra.mxu1 %vm354_vm3, %v277_v6 }
  0xf3   :  { %2960 = vmatmul.msk.bf16.gmra.mxu2 %vm354_vm3, %v277_v6  ;;  %2973 = vmatmul.msk.bf16.gmra.mxu3 %vm354_vm3, %v277_v6 }
  0xff   :  { %v397_v12 = vpop.f32.mrf.mxu0  ;;  %v471_v13 = vpop.f32.mrf.mxu1 }
 0x102   :  { %2895 = vmatmul.msk.bf16.gmra.mxu0 %vm354_vm3, %v279_v63  ;;  %2908 = vmatmul.msk.bf16.gmra.mxu1 %vm354_vm3, %v279_v63 }
 0x103   :  { %2961 = vmatmul.msk.bf16.gmra.mxu2 %vm354_vm3, %v279_v63  ;;  %2974 = vmatmul.msk.bf16.gmra.mxu3 %vm354_vm3, %v279_v63 }
 0x106   :  { %v617_v14 = vpop.f32.mrf.mxu2  ;;  %v691_v16 = vpop.f32.mrf.mxu3 }
 0x107   :  { %v399_v17 = vpop.f32.mrf.mxu0  ;;  %v473_v18 = vpop.f32.mrf.mxu1  ;;  %v756_v33 = vmax.f32 %v397_v12, %v617_v14  ;;  %v757_v41 = vmax.f32 %v471_v13, %v691_v16  ;;  %v283_v16 = vsel %vm261_vm2, %v254_v4, %v216_v5 }
 0x109   :  { %v814_v56 = vadd.f32 %v4329_v30, %v756_v33  ;;  %v815_v0 = vadd.f32 %v4331_v32, %v757_v41  ;;  %v2997_v41 = vld [vmem:[%s5475_s4 + $0x20] sm:$0xf] }
 0x10b   :  { %v866_v12 = vmax.f32 %v814_v56, 0.0  ;;  %v867_v13 = vmax.f32 %v815_v0, 0.0  ;;  %v3157_v56 = vld [vmem:[%s5475_s4 + $0x160] sm:$0xf] }
 0x10c   :  { %v2981_v0 = vld [vmem:[%s5475_s4] sm:$0xf] }
 0x10e   :  { %v619_v21 = vpop.f32.mrf.mxu2  ;;  %v693_v22 = vpop.f32.mrf.mxu3 }
 0x10f   :  { %v4311_v23 = vpop.f32.mrf.mxu0  ;;  %v4313_v24 = vpop.f32.mrf.mxu1  ;;  %v758_v34 = vmax.f32 %v399_v17, %v619_v21  ;;  %v759_v36 = vmax.f32 %v473_v18, %v693_v22  ;;  %v3014_v21 = vor.u32 %v3566_v8, %v3013_v7  ;;  %v2982_v7 = vor.u32 %v3558_v39, %v2981_v0 }
 0x111   :  { %v816_v57 = vadd.f32 %v4329_v30, %v758_v34  ;;  %v817_v58 = vadd.f32 %v4331_v32, %v759_v36  ;;  %1465 = vmatpush.bf16.msrb.mxu0 %v3014_v21  ;;  %v3006_v36 = vor.u32 %v3564_v27, %v3005_v26 }
 0x112   :  { %2896 = vmatmul.msk.bf16.gmra.mxu0 %vm354_vm3, %v281_v25  ;;  %2909 = vmatmul.msk.bf16.gmra.mxu1 %vm354_vm3, %v281_v25 }
 0x113   :  { %2962 = vmatmul.msk.bf16.gmra.mxu2 %vm354_vm3, %v281_v25  ;;  %2975 = vmatmul.msk.bf16.gmra.mxu3 %vm354_vm3, %v281_v25  ;;  %v868_v6 = vmax.f32 %v816_v57, 0.0  ;;  %v869_v61 = vmax.f32 %v817_v58, 0.0  ;;  %v3602_v57 = vld [vmem:[%s5475_s4 + $0x164] sm:$0xf0] }
 0x114   :  { %v3158_v59 = vor.u32 %v3602_v57, %v3157_v56  ;;  %v3600_v56 = vld [vmem:[%s5475_s4 + $0x154] sm:$0xf0] }
 0x115   :  { %v918_v22 = vmax.f32 %v866_v12, %v868_v6  ;;  %1466 = vmatpush.bf16.msrb.mxu0 %v3006_v36 }
 0x116   :  { %v622_v42 = vpop.f32.mrf.mxu2  ;;  %v696_v43 = vpop.f32.mrf.mxu3  ;;  %1537 = vmatpush.bf16.msrb.mxu2 %v3158_v59 }
 0x117   :  { %v404_v48 = vpop.f32.mrf.mxu0  ;;  %v478_v49 = vpop.f32.mrf.mxu1  ;;  %v760_v3 = vmax.f32 %v4311_v23, %v622_v42  ;;  %v761_v60 = vmax.f32 %v4313_v24, %v696_v43  ;;  %v919_v23 = vmax.f32 %v867_v13, %v869_v61  ;;  %v3562_v42 = vld [vmem:[%s5475_s4 + $0x24] sm:$0xf0] }
 0x119   :  { %v818_v31 = vadd.f32 %v4329_v30, %v760_v3  ;;  %v819_v17 = vadd.f32 %v4331_v32, %v761_v60  ;;  %v4391_v37 = vpack.c.bf16 %v919_v23, %v918_v22 }
 0x11b   :  { %v870_v28 = vmax.f32 %v818_v31, 0.0  ;;  %v871_v29 = vmax.f32 %v819_v17, 0.0  ;;  %v969_v51 = vunpack.c.h.b16 %v4391_v37 }
 0x11e   :  { %v624_v63 = vpop.f32.mrf.mxu2  ;;  %v698_v14 = vpop.f32.mrf.mxu3 }
 0x11f   :  { %v762_v18 = vmax.f32 %v404_v48, %v624_v63  ;;  %v763_v19 = vmax.f32 %v478_v49, %v698_v14  ;;  %v407_v15 = vpop.f32.mrf.mxu0  ;;  %v481_v20 = vpop.f32.mrf.mxu1  ;;  %v2998_v48 = vor.u32 %v3562_v42, %v2997_v41 }
 0x121   :  { %v820_v24 = vadd.f32 %v4329_v30, %v762_v18  ;;  %v821_v25 = vadd.f32 %v4331_v32, %v763_v19  ;;  %1467 = vmatpush.bf16.msrb.mxu0 %v2998_v48  ;;  %v191_v18 = vpop.permute.xlu0 %190  ;;  %v3093_v19 = vld [vmem:[%s5475_s4 + $0xe0] sm:$0xf] }
 0x122   :  { %2897 = vmatmul.msk.bf16.gmra.mxu0 %vm354_vm3, %v283_v16  ;;  %2910 = vmatmul.msk.bf16.gmra.mxu1 %vm354_vm3, %v283_v16 }
 0x123   :  { %v872_v33 = vmax.f32 %v820_v24, 0.0  ;;  %v873_v34 = vmax.f32 %v821_v25, 0.0  ;;  %2963 = vmatmul.msk.bf16.gmra.mxu2 %vm354_vm3, %v283_v16  ;;  %2976 = vmatmul.msk.bf16.gmra.mxu3 %vm354_vm3, %v283_v16 }
 0x125   :  { %v920_v38 = vmax.f32 %v870_v28, %v872_v33  ;;  %v921_v40 = vmax.f32 %v871_v29, %v873_v34  ;;  %1468 = vmatpush.bf16.msrb.mxu0 %v2990_v62  ;;  %v260_v29 = vsel %vm221_vm1, %v4270_v54, %v191_v18  ;;  %v3150_v62 = vor.u32 %v3600_v56, %v3149_v55  ;;  %v3582_v55 = vld [vmem:[%s5475_s4 + $0xc4] sm:$0xf0] }
 0x126   :  { %v627_v43 = vpop.f32.mrf.mxu2  ;;  %v701_v44 = vpop.f32.mrf.mxu3 }
 0x127   :  { %v409_v45 = vpop.f32.mrf.mxu0  ;;  %v483_v9 = vpop.f32.mrf.mxu1  ;;  %v4399_v46 = vpack.c.bf16 %v921_v40, %v920_v38  ;;  %v764_v52 = vmax.f32 %v407_v15, %v627_v43  ;;  %v765_v53 = vmax.f32 %v481_v20, %v701_v44  ;;  %v3586_v15 = vld [vmem:[%s5475_s4 + $0xe4] sm:$0xf0]  ;;  %1538 = vmatpush.bf16.msrb.mxu2 %v3150_v62  ;;  %v3141_v62 = vld [vmem:[%s5475_s4 + $0x140] sm:$0xf] }
 0x128   :  { %v3094_v22 = vor.u32 %v3586_v15, %v3093_v19  ;;  %v220_v40 = vpop.permute.xlu1 %219 }
 0x129   :  { %v971_v49 = vunpack.c.h.b16 %v4399_v46  ;;  %v822_v3 = vadd.f32 %v4329_v30, %v764_v52  ;;  %v823_v60 = vadd.f32 %v4331_v32, %v765_v53  ;;  %1469 = vmatpush.bf16.msrb.mxu0 %v2982_v7  ;;  %v970_v27 = vunpack.c.l.b16 %v4399_v46 }
 0x12a   :  { %1500 = vmatpush.bf16.msrb.mxu1 %v3094_v22  ;;  %v287_v43 = vsel %vm261_vm2, %v260_v29, %v220_v40 }
 0x12b   :  { %v4417_v58 = vpack.c.b16 %v971_v49, %v969_v51  ;;  %v874_v13 = vmax.f32 %v822_v3, 0.0  ;;  %v875_v63 = vmax.f32 %v823_v60, 0.0 }
 0x12e   :  { %v629_v35 = vpop.f32.mrf.mxu2  ;;  %v703_v1 = vpop.f32.mrf.mxu3 }
 0x12f   :  { %v766_v4 = vmax.f32 %v409_v45, %v629_v35  ;;  %v767_v5 = vmax.f32 %v483_v9, %v703_v1  ;;  %v412_v6 = vpop.f32.mrf.mxu0  ;;  %v486_v61 = vpop.f32.mrf.mxu1 }
 0x131   :  { %v824_v8 = vadd.f32 %v4329_v30, %v766_v4  ;;  %v825_v12 = vadd.f32 %v4331_v32, %v767_v5 }
 0x132   :  { %2898 = vmatmul.msk.bf16.gmra.mxu0 %vm354_vm3, %v285_v2  ;;  %2911 = vmatmul.msk.bf16.gmra.mxu1 %vm354_vm3, %v285_v2 }
 0x133   :  { %v876_v14 = vmax.f32 %v824_v8, 0.0  ;;  %v877_v16 = vmax.f32 %v825_v12, 0.0  ;;  %2964 = vmatmul.msk.bf16.gmra.mxu2 %vm354_vm3, %v285_v2  ;;  %2977 = vmatmul.msk.bf16.gmra.mxu3 %vm354_vm3, %v285_v2 }
 0x135   :  { %v922_v31 = vmax.f32 %v874_v13, %v876_v14  ;;  %v923_v17 = vmax.f32 %v875_v63, %v877_v16  ;;  %v968_v13 = vunpack.c.l.b16 %v4391_v37 }
 0x136   :  { %v632_v20 = vpop.f32.mrf.mxu2  ;;  %v706_v21 = vpop.f32.mrf.mxu3 }
 0x137   :  { %v414_v23 = vpop.f32.mrf.mxu0  ;;  %v488_v24 = vpop.f32.mrf.mxu1  ;;  %v946_v25 = vpack.c.bf16 %v923_v17, %v922_v31  ;;  %v768_v33 = vmax.f32 %v412_v6, %v632_v20  ;;  %v769_v34 = vmax.f32 %v486_v61, %v706_v21  ;;  %v3085_v6 = vld [vmem:[%s5475_s4 + $0xd0] sm:$0xf]  ;;  %v3584_v61 = vld [vmem:[%s5475_s4 + $0xd4] sm:$0xf0]  ;;  %v4477_v19 = vpack.c.b16 %v970_v27, %v968_v13 }
 0x138   :  { %v3086_v7 = vor.u32 %v3584_v61, %v3085_v6  ;;  %v3069_v6 = vld [vmem:[%s5475_s4 + $0xb0] sm:$0xf]  ;;  %v3580_v61 = vld [vmem:[%s5475_s4 + $0xb4] sm:$0xf0] }
 0x139   :  { %v973_v26 = vunpack.c.h.b16 %v946_v25  ;;  %v972_v28 = vunpack.c.l.b16 %v946_v25  ;;  %v826_v44 = vadd.f32 %v4329_v30, %v768_v33  ;;  %v827_v45 = vadd.f32 %v4331_v32, %v769_v34 }
 0x13a   :  { %1501 = vmatpush.bf16.msrb.mxu1 %v3086_v7  ;;  %v3070_v7 = vor.u32 %v3580_v61, %v3069_v6 }
 0x13b   :  { %v1012_v36 = vpack.c.b16 %v973_v26, %v971_v49  ;;  %v1011_v38 = vpack.c.b16 %v972_v28, %v970_v27  ;;  %v878_v10 = vmax.f32 %v826_v44, 0.0  ;;  %v879_v50 = vmax.f32 %v827_v45, 0.0 }
 0x13d   :  { %1025 = vrot.lane.b32.xlu0 %v1012_v36, %s3900_s23  ;;  %1023 = vrot.lane.b32.xlu2 %v1011_v38, %s3900_s23 }
 0x13e   :  { %v634_v41 = vpop.f32.mrf.mxu2  ;;  %v708_v42 = vpop.f32.mrf.mxu3 }
 0x13f   :  { %v770_v9 = vmax.f32 %v414_v23, %v634_v41  ;;  %v771_v54 = vmax.f32 %v488_v24, %v708_v42  ;;  %v417_v46 = vpop.f32.mrf.mxu0  ;;  %v491_v47 = vpop.f32.mrf.mxu1 }
 0x141   :  { %v828_v48 = vadd.f32 %v4329_v30, %v770_v9  ;;  %v829_v49 = vadd.f32 %v4331_v32, %v771_v54 }
 0x142   :  { %2899 = vmatmul.msk.bf16.gmra.mxu0 %vm354_vm3, %v287_v43  ;;  %2912 = vmatmul.msk.bf16.gmra.mxu1 %vm354_vm3, %v287_v43 }
 0x143   :  { %v880_v51 = vmax.f32 %v828_v48, 0.0  ;;  %v881_v52 = vmax.f32 %v829_v49, 0.0  ;;  %2965 = vmatmul.msk.bf16.gmra.mxu2 %vm354_vm3, %v287_v43  ;;  %2978 = vmatmul.msk.bf16.gmra.mxu3 %vm354_vm3, %v287_v43 }
 0x145   :  { %v924_v53 = vmax.f32 %v878_v10, %v880_v51  ;;  %v925_v11 = vmax.f32 %v879_v50, %v881_v52 }
 0x146   :  { %v637_v57 = vpop.f32.mrf.mxu2  ;;  %v711_v59 = vpop.f32.mrf.mxu3 }
 0x147   :  { %v419_v0 = vpop.f32.mrf.mxu0  ;;  %v493_v39 = vpop.f32.mrf.mxu1  ;;  %v947_v35 = vpack.c.bf16 %v925_v11, %v924_v53  ;;  %v772_v3 = vmax.f32 %v417_v46, %v637_v57  ;;  %v773_v60 = vmax.f32 %v491_v47, %v711_v59  ;;  %v3077_v11 = vld [vmem:[%s5475_s4 + $0xc0] sm:$0xf] }
 0x148   :  { %v3078_v56 = vor.u32 %v3582_v55, %v3077_v11  ;;  %v3133_v11 = vld [vmem:[%s5475_s4 + $0x130] sm:$0xf]  ;;  %v3596_v55 = vld [vmem:[%s5475_s4 + $0x134] sm:$0xf0] }
 0x149   :  { %v975_v1 = vunpack.c.h.b16 %v947_v35  ;;  %v974_v2 = vunpack.c.l.b16 %v947_v35  ;;  %v830_v63 = vadd.f32 %v4329_v30, %v772_v3  ;;  %v831_v14 = vadd.f32 %v4331_v32, %v773_v60 }
 0x14a   :  { %1502 = vmatpush.bf16.msrb.mxu1 %v3078_v56  ;;  %v3134_v56 = vor.u32 %v3596_v55, %v3133_v11  ;;  %v3023_v11 = vld [vmem:[%s5475_s4 + $0x58] sm:$0xf0] }
 0x14b   :  { %v4460_v4 = vpack.c.b16 %v975_v1, %v973_v26  ;;  %v4462_v5 = vpack.c.b16 %v974_v2, %v972_v28  ;;  %v882_v21 = vmax.f32 %v830_v63, 0.0  ;;  %v883_v22 = vmax.f32 %v831_v14, 0.0 }
 0x14d   :  { %1063 = vrot.lane.b32.xlu2 %v4460_v4, %s3897_s27  ;;  %1061 = vrot.lane.b32.xlu1 %v4462_v5, %s3897_s27 }
 0x14e   :  { %v639_v8 = vpop.f32.mrf.mxu2  ;;  %v713_v12 = vpop.f32.mrf.mxu3  ;;  %1503 = vmatpush.bf16.msrb.mxu1 %v3070_v7 }
 0x14f   :  { %v774_v16 = vmax.f32 %v419_v0, %v639_v8  ;;  %v775_v31 = vmax.f32 %v493_v39, %v713_v12  ;;  %v422_v17 = vpop.f32.mrf.mxu0  ;;  %v496_v18 = vpop.f32.mrf.mxu1  ;;  %v3598_v0 = vld [vmem:[%s5475_s4 + $0x144] sm:$0xf0] }
 0x151   :  { %v832_v15 = vadd.f32 %v4329_v30, %v774_v16  ;;  %v833_v20 = vadd.f32 %v4331_v32, %v775_v31  ;;  %v3061_v31 = vld [vmem:[%s5475_s4 + $0xa0] sm:$0xf] }
 0x152   :  { %1470 = vmatmul.bf16.vlgmr.msrb.gmra.mxu0 %v4477_v19 }
 0x153   :  { %v884_v37 = vmax.f32 %v832_v15, 0.0  ;;  %v885_v23 = vmax.f32 %v833_v20, 0.0 }
 0x155   :  { %v926_v24 = vmax.f32 %v882_v21, %v884_v37  ;;  %v927_v25 = vmax.f32 %v883_v22, %v885_v23 }
 0x156   :  { %v642_v26 = vpop.f32.mrf.mxu2  ;;  %v716_v28 = vpop.f32.mrf.mxu3 }
 0x157   :  { %v424_v29 = vpop.f32.mrf.mxu0  ;;  %v498_v33 = vpop.f32.mrf.mxu1  ;;  %v948_v34 = vpack.c.bf16 %v927_v25, %v926_v24  ;;  %v776_v38 = vmax.f32 %v422_v17, %v642_v26  ;;  %v777_v40 = vmax.f32 %v496_v18, %v716_v28  ;;  %v3578_v17 = vld [vmem:[%s5475_s4 + $0xa4] sm:$0xf0]  ;;  %v3053_v26 = vld [vmem:[%s5475_s4 + $0x90] sm:$0xf]  ;;  %v3576_v28 = vld [vmem:[%s5475_s4 + $0x94] sm:$0xf0] }
 0x158   :  { %v3062_v18 = vor.u32 %v3578_v17, %v3061_v31 }
 0x159   :  { %v977_v36 = vunpack.c.h.b16 %v948_v34  ;;  %v976_v27 = vunpack.c.l.b16 %v948_v34  ;;  %v834_v43 = vadd.f32 %v4329_v30, %v776_v38  ;;  %v835_v44 = vadd.f32 %v4331_v32, %v777_v40 }
 0x15a   :  { %1504 = vmatpush.bf16.msrb.mxu1 %v3062_v18  ;;  %v3054_v34 = vor.u32 %v3576_v28, %v3053_v26  ;;  %v3039_v26 = vld [vmem:[%s5475_s4 + $0x78] sm:$0xf0] }
 0x15b   :  { %v1014_v41 = vpack.c.b16 %v977_v36, %v975_v1  ;;  %v1013_v42 = vpack.c.b16 %v976_v27, %v974_v2  ;;  %v886_v50 = vmax.f32 %v834_v43, 0.0  ;;  %v887_v51 = vmax.f32 %v835_v44, 0.0 }
 0x15c   :  { %v3142_v1 = vor.u32 %v3598_v0, %v3141_v62 }
 0x15d   :  { %1029 = vrot.lane.b32.xlu1 %v1014_v41, %s3900_s23  ;;  %1027 = vrot.lane.b32.xlu0 %v1013_v42, %s3900_s23  ;;  %v3045_v41 = vld [vmem:[%s5475_s4 + $0x80] sm:$0xf]  ;;  %v3574_v42 = vld [vmem:[%s5475_s4 + $0x84] sm:$0xf0] }
 0x15e   :  { %v644_v45 = vpop.f32.mrf.mxu2  ;;  %v718_v9 = vpop.f32.mrf.mxu3  ;;  %1539 = vmatpush.bf16.msrb.mxu2 %v3142_v1  ;;  %1505 = vmatpush.bf16.msrb.mxu1 %v3054_v34 }
 0x15f   :  { %v778_v54 = vmax.f32 %v424_v29, %v644_v45  ;;  %v779_v46 = vmax.f32 %v498_v33, %v718_v9  ;;  %v427_v47 = vpop.f32.mrf.mxu0  ;;  %v501_v48 = vpop.f32.mrf.mxu1  ;;  %v3046_v45 = vor.u32 %v3574_v42, %v3045_v41  ;;  %v3569_v42 = vld [vmem:[%s5475_s4 + $0x64] sm:$0xf] }
 0x161   :  { %v836_v49 = vadd.f32 %v4329_v30, %v778_v54  ;;  %v837_v10 = vadd.f32 %v4331_v32, %v779_v46 }
 0x162   :  { %1475 = vmatmul.bf16.gmra.mxu0 %v4462_v5  ;;  %1506 = vmatpush.bf16.msrb.mxu1 %v3046_v45 }
 0x163   :  { %v888_v52 = vmax.f32 %v836_v49, 0.0  ;;  %v889_v53 = vmax.f32 %v837_v10, 0.0  ;;  %1540 = vmatpush.bf16.msrb.mxu2 %v3134_v56 }
 0x165   :  { %v928_v57 = vmax.f32 %v886_v50, %v888_v52  ;;  %v929_v59 = vmax.f32 %v887_v51, %v889_v53 }
 0x166   :  { %v647_v39 = vpop.f32.mrf.mxu2  ;;  %v721_v35 = vpop.f32.mrf.mxu3 }
 0x167   :  { %v429_v2 = vpop.f32.mrf.mxu0  ;;  %v503_v3 = vpop.f32.mrf.mxu1  ;;  %v949_v60 = vpack.c.bf16 %v929_v59, %v928_v57  ;;  %v780_v13 = vmax.f32 %v427_v47, %v647_v39  ;;  %v781_v63 = vmax.f32 %v501_v48, %v721_v35 }
 0x169   :  { %v979_v8 = vunpack.c.h.b16 %v949_v60  ;;  %v978_v12 = vunpack.c.l.b16 %v949_v60  ;;  %v838_v21 = vadd.f32 %v4329_v30, %v780_v13  ;;  %v839_v22 = vadd.f32 %v4331_v32, %v781_v63 }
 0x16b   :  { %v4507_v14 = vpack.c.b16 %v979_v8, %v977_v36  ;;  %v4509_v16 = vpack.c.b16 %v978_v12, %v976_v27  ;;  %v890_v36 = vmax.f32 %v838_v21, 0.0  ;;  %v891_v27 = vmax.f32 %v839_v22, 0.0 }
 0x16d   :  { %1067 = vrot.lane.b32.xlu0 %v4507_v14, %s3897_s27  ;;  %1065 = vrot.lane.b32.xlu2 %v4509_v16, %s3897_s27 }
 0x16e   :  { %v649_v15 = vpop.f32.mrf.mxu2  ;;  %v723_v20 = vpop.f32.mrf.mxu3 }
 0x16f   :  { %v782_v37 = vmax.f32 %v429_v2, %v649_v15  ;;  %v783_v23 = vmax.f32 %v503_v3, %v723_v20  ;;  %v432_v24 = vpop.f32.mrf.mxu0  ;;  %v506_v25 = vpop.f32.mrf.mxu1 }
 0x171   :  { %v840_v29 = vadd.f32 %v4329_v30, %v782_v37  ;;  %v841_v33 = vadd.f32 %v4331_v32, %v783_v23 }
 0x172   :  { %1480 = vmatmul.bf16.gmra.mxu0 %v4509_v16 }
 0x173   :  { %v892_v38 = vmax.f32 %v840_v29, 0.0  ;;  %v893_v40 = vmax.f32 %v841_v33, 0.0 }
 0x175   :  { %v930_v43 = vmax.f32 %v890_v36, %v892_v38  ;;  %v931_v44 = vmax.f32 %v891_v27, %v893_v40 }
 0x176   :  { %v652_v9 = vpop.f32.mrf.mxu2  ;;  %v726_v54 = vpop.f32.mrf.mxu3 }
 0x177   :  { %v434_v46 = vpop.f32.mrf.mxu0  ;;  %v508_v47 = vpop.f32.mrf.mxu1  ;;  %v950_v48 = vpack.c.bf16 %v931_v44, %v930_v43  ;;  %v784_v50 = vmax.f32 %v432_v24, %v652_v9  ;;  %v785_v51 = vmax.f32 %v506_v25, %v726_v54  ;;  %v3571_v25 = vld [vmem:[%s5475_s4 + $0x74] sm:$0xf]  ;;  %v3031_v43 = vld [vmem:[%s5475_s4 + $0x68] sm:$0xf0] }
 0x178   :  { %v3042_v28 = vor.u32 %v3571_v25, %v3039_v26  ;;  %v3034_v9 = vor.u32 %v3569_v42, %v3031_v43 }
 0x179   :  { %v981_v49 = vunpack.c.h.b16 %v950_v48  ;;  %v980_v10 = vunpack.c.l.b16 %v950_v48  ;;  %v842_v62 = vadd.f32 %v4329_v30, %v784_v50  ;;  %v843_v0 = vadd.f32 %v4331_v32, %v785_v51  ;;  %v3567_v50 = vld [vmem:[%s5475_s4 + $0x54] sm:$0xf] }
 0x17a   :  { %1610 = vmatpush.bf16.msra.mxu0 %v3042_v28 }
 0x17b   :  { %v1016_v52 = vpack.c.b16 %v981_v49, %v979_v8  ;;  %v1015_v53 = vpack.c.b16 %v980_v10, %v978_v12  ;;  %v894_v6 = vmax.f32 %v842_v62, 0.0  ;;  %v895_v61 = vmax.f32 %v843_v0, 0.0 }
 0x17d   :  { %1033 = vrot.lane.b32.xlu2 %v1016_v52, %s3900_s23  ;;  %1031 = vrot.lane.b32.xlu1 %v1015_v53, %s3900_s23 }
 0x17e   :  { %v654_v57 = vpop.f32.mrf.mxu2  ;;  %v728_v59 = vpop.f32.mrf.mxu3  ;;  %1611 = vmatpush.bf16.msra.mxu0 %v3034_v9  ;;  %v3559_v9 = vld [vmem:[%s5475_s4 + $0x14] sm:$0xf] }
 0x17f   :  { %v786_v39 = vmax.f32 %v434_v46, %v654_v57  ;;  %v787_v35 = vmax.f32 %v508_v47, %v728_v59  ;;  %v437_v1 = vpop.f32.mrf.mxu0  ;;  %v511_v2 = vpop.f32.mrf.mxu1  ;;  %v3026_v57 = vor.u32 %v3567_v50, %v3023_v11  ;;  %v2983_v11 = vld [vmem:[%s5475_s4 + $0x8] sm:$0xf0] }
 0x181   :  { %v844_v3 = vadd.f32 %v4329_v30, %v786_v39  ;;  %v845_v60 = vadd.f32 %v4331_v32, %v787_v35 }
 0x182   :  { %1612 = vmatpush.bf16.msra.mxu0 %v3026_v57 }
 0x183   :  { %v896_v7 = vmax.f32 %v844_v3, 0.0  ;;  %v897_v8 = vmax.f32 %v845_v60, 0.0  ;;  %v3565_v3 = vld [vmem:[%s5475_s4 + $0x44] sm:$0xf] }
 0x185   :  { %v932_v12 = vmax.f32 %v894_v6, %v896_v7  ;;  %v933_v13 = vmax.f32 %v895_v61, %v897_v8  ;;  %v3015_v6 = vld [vmem:[%s5475_s4 + $0x48] sm:$0xf0] }
 0x186   :  { %v657_v63 = vpop.f32.mrf.mxu2  ;;  %v731_v31 = vpop.f32.mrf.mxu3  ;;  %v3018_v7 = vor.u32 %v3565_v3, %v3015_v6 }
 0x187   :  { %v439_v17 = vpop.f32.mrf.mxu0  ;;  %v513_v18 = vpop.f32.mrf.mxu1  ;;  %v4550_v15 = vpack.c.bf16 %v933_v13, %v932_v12  ;;  %v788_v22 = vmax.f32 %v437_v1, %v657_v63  ;;  %v789_v37 = vmax.f32 %v511_v2, %v731_v31  ;;  %v3117_v1 = vld [vmem:[%s5475_s4 + $0x110] sm:$0xf]  ;;  %v3592_v2 = vld [vmem:[%s5475_s4 + $0x114] sm:$0xf0]  ;;  %v3109_v31 = vld [vmem:[%s5475_s4 + $0x100] sm:$0xf] }
 0x188   :  { %v3118_v61 = vor.u32 %v3592_v2, %v3117_v1  ;;  %1613 = vmatpush.bf16.msra.mxu0 %v3018_v7 }
 0x189   :  { %v983_v20 = vunpack.c.h.b16 %v4550_v15  ;;  %v982_v21 = vunpack.c.l.b16 %v4550_v15  ;;  %v846_v34 = vadd.f32 %v4329_v30, %v788_v22  ;;  %v847_v36 = vadd.f32 %v4331_v32, %v789_v37 }
 0x18b   :  { %v4554_v23 = vpack.c.b16 %v983_v20, %v981_v49  ;;  %v4556_v24 = vpack.c.b16 %v982_v21, %v980_v10  ;;  %v898_v54 = vmax.f32 %v846_v34, 0.0  ;;  %v899_v46 = vmax.f32 %v847_v36, 0.0  ;;  %v3125_v49 = vld [vmem:[%s5475_s4 + $0x120] sm:$0xf]  ;;  %v3594_v10 = vld [vmem:[%s5475_s4 + $0x124] sm:$0xf0] }
 0x18c   :  { %v3126_v53 = vor.u32 %v3594_v10, %v3125_v49  ;;  %v3561_v36 = vld [vmem:[%s5475_s4 + $0x24] sm:$0xf] }
 0x18d   :  { %1071 = vrot.lane.b32.xlu1 %v4554_v23, %s3897_s27  ;;  %1069 = vrot.lane.b32.xlu0 %v4556_v24, %s3897_s27 }
 0x18e   :  { %1485 = vmatmul.bf16.gmra.mxu0 %v4556_v24  ;;  %v659_v29 = vpop.f32.mrf.mxu2  ;;  %v733_v33 = vpop.f32.mrf.mxu3  ;;  %1541 = vmatpush.bf16.msrb.mxu2 %v3126_v53  ;;  %v3557_v53 = vld [vmem:[%s5475_s4 + $0x4] sm:$0xf] }
 0x18f   :  { %v790_v27 = vmax.f32 %v439_v17, %v659_v29  ;;  %v791_v38 = vmax.f32 %v513_v18, %v733_v33  ;;  %v442_v40 = vpop.f32.mrf.mxu0  ;;  %v516_v41 = vpop.f32.mrf.mxu1  ;;  %v3590_v17 = vld [vmem:[%s5475_s4 + $0x104] sm:$0xf0]  ;;  %v3563_v18 = vld [vmem:[%s5475_s4 + $0x34] sm:$0xf]  ;;  %v2986_v57 = vor.u32 %v3557_v53, %v2983_v11 }
 0x190   :  { %v3110_v15 = vor.u32 %v3590_v17, %v3109_v31 }
 0x191   :  { %v848_v44 = vadd.f32 %v4329_v30, %v790_v27  ;;  %v849_v45 = vadd.f32 %v4331_v32, %v791_v38  ;;  %v2999_v27 = vld [vmem:[%s5475_s4 + $0x28] sm:$0xf0] }
 0x192   :  { %1542 = vmatpush.bf16.msrb.mxu2 %v3118_v61 }
 0x193   :  { %v900_v47 = vmax.f32 %v848_v44, 0.0  ;;  %v901_v48 = vmax.f32 %v849_v45, 0.0 }
 0x195   :  { %v934_v51 = vmax.f32 %v898_v54, %v900_v47  ;;  %v935_v52 = vmax.f32 %v899_v46, %v901_v48  ;;  %v2991_v54 = vld [vmem:[%s5475_s4 + $0x18] sm:$0xf0] }
 0x196   :  { %v662_v55 = vpop.f32.mrf.mxu2  ;;  %v736_v56 = vpop.f32.mrf.mxu3  ;;  %1543 = vmatpush.bf16.msrb.mxu2 %v3110_v15  ;;  %v2994_v48 = vor.u32 %v3559_v9, %v2991_v54 }
 0x197   :  { %v4591_v59 = vpop.permute.xlu2 %1023  ;;  %v444_v62 = vpop.f32.mrf.mxu0  ;;  %v4593_v0 = vpack.c.bf16 %v935_v52, %v934_v51  ;;  %v792_v8 = vmax.f32 %v442_v40, %v662_v55  ;;  %v793_v12 = vmax.f32 %v516_v41, %v736_v56  ;;  %v3002_v41 = vor.u32 %v3561_v36, %v2999_v27 }
 0x198   :  { %v4598_v39 = vsel %vm1047_vm5, %v4417_v58, %v4591_v59  ;;  %v518_v35 = vpop.f32.mrf.mxu1 }
 0x199   :  { %1507 = vmatmul.bf16.vlgmr.msrb.gmra.mxu1 %v4598_v39  ;;  %v985_v60 = vunpack.c.h.b16 %v4593_v0  ;;  %v984_v58 = vunpack.c.l.b16 %v4593_v0  ;;  %v850_v25 = vadd.f32 %v4329_v30, %v792_v8  ;;  %v851_v26 = vadd.f32 %v4331_v32, %v793_v12 }
 0x19b   :  { %v1018_v13 = vpack.c.b16 %v985_v60, %v983_v20  ;;  %v1017_v63 = vpack.c.b16 %v984_v58, %v982_v21  ;;  %v3007_v20 = vld [vmem:[%s5475_s4 + $0x38] sm:$0xf0]  ;;  %v902_v42 = vmax.f32 %v850_v25, 0.0  ;;  %v903_v43 = vmax.f32 %v851_v26, 0.0 }
 0x19c   :  { %v3010_v37 = vor.u32 %v3563_v18, %v3007_v20 }
 0x19d   :  { %1037 = vrot.lane.b32.xlu0 %v1018_v13, %s3900_s23  ;;  %1035 = vrot.lane.b32.xlu2 %v1017_v63, %s3900_s23 }
 0x19e   :  { %v664_v21 = vpop.f32.mrf.mxu2  ;;  %v738_v22 = vpop.f32.mrf.mxu3  ;;  %1614 = vmatpush.bf16.msra.mxu0 %v3010_v37 }
 0x19f   :  { %v794_v28 = vmax.f32 %v444_v62, %v664_v21  ;;  %v795_v29 = vmax.f32 %v518_v35, %v738_v22  ;;  %v447_v33 = vpop.f32.mrf.mxu0 }
 0x1a0   :  { %v521_v34 = vpop.f32.mrf.mxu1 }
 0x1a1   :  { %v852_v38 = vadd.f32 %v4329_v30, %v794_v28  ;;  %v853_v40 = vadd.f32 %v4331_v32, %v795_v29 }
 0x1a2   :  { %1615 = vmatpush.bf16.msra.mxu0 %v3002_v41 }
 0x1a3   :  { %v904_v44 = vmax.f32 %v852_v38, 0.0  ;;  %v905_v45 = vmax.f32 %v853_v40, 0.0 }
 0x1a5   :  { %v936_v46 = vmax.f32 %v902_v42, %v904_v44  ;;  %v937_v47 = vmax.f32 %v903_v43, %v905_v45 }
 0x1a6   :  { %v667_v49 = vpop.f32.mrf.mxu2  ;;  %v741_v10 = vpop.f32.mrf.mxu3  ;;  %1616 = vmatpush.bf16.msra.mxu0 %v2994_v48 }
 0x1a7   :  { %v449_v50 = vpop.f32.mrf.mxu0  ;;  %v953_v51 = vpack.c.bf16 %v937_v47, %v936_v46  ;;  %v796_v62 = vmax.f32 %v447_v33, %v667_v49  ;;  %v797_v0 = vmax.f32 %v521_v34, %v741_v10  ;;  %v1064_v44 = vpop.permute.xlu2 %1063 }
 0x1a8   :  { %v523_v52 = vpop.f32.mrf.mxu1 }
 0x1a9   :  { %v987_v55 = vunpack.c.h.b16 %v953_v51  ;;  %v986_v56 = vunpack.c.l.b16 %v953_v51  ;;  %v854_v6 = vadd.f32 %v4329_v30, %v796_v62  ;;  %v855_v61 = vadd.f32 %v4331_v32, %v797_v0 }
 0x1aa   :  { %1617 = vmatpush.bf16.msra.mxu0 %v2986_v57 }
 0x1ab   :  { %v4651_v35 = vpack.c.b16 %v987_v55, %v985_v60  ;;  %v4653_v1 = vpack.c.b16 %v986_v56, %v984_v58  ;;  %v906_v63 = vmax.f32 %v854_v6, 0.0  ;;  %v907_v31 = vmax.f32 %v855_v61, 0.0 }
 0x1ad   :  { %1075 = vrot.lane.b32.xlu2 %v4651_v35, %s3897_s27  ;;  %1073 = vrot.lane.b32.xlu1 %v4653_v1, %s3897_s27 }
 0x1ae   :  { %1490 = vmatmul.bf16.gmra.mxu0 %v4653_v1  ;;  %v669_v2 = vpop.f32.mrf.mxu2  ;;  %v743_v3 = vpop.f32.mrf.mxu3 }
 0x1af   :  { %v798_v7 = vmax.f32 %v449_v50, %v669_v2  ;;  %v799_v60 = vmax.f32 %v523_v52, %v743_v3  ;;  %v452_v8 = vpop.f32.mrf.mxu0  ;;  %v1026_v33 = vpop.permute.xlu0 %1025 }
 0x1b0   :  { %v526_v58 = vpop.f32.mrf.mxu1  ;;  %v1048_v41 = vsel %vm1047_vm5, %v4591_v59, %v1026_v33 }
 0x1b1   :  { %v856_v12 = vadd.f32 %v4329_v30, %v798_v7  ;;  %v857_v13 = vadd.f32 %v4331_v32, %v799_v60 }
 0x1b3   :  { %v908_v17 = vmax.f32 %v856_v12, 0.0  ;;  %v909_v18 = vmax.f32 %v857_v13, 0.0 }
 0x1b5   :  { %v938_v15 = vmax.f32 %v906_v63, %v908_v17  ;;  %v939_v20 = vmax.f32 %v907_v31, %v909_v18 }
 0x1b6   :  { %v672_v21 = vpop.f32.mrf.mxu2  ;;  %v746_v22 = vpop.f32.mrf.mxu3 }
 0x1b7   :  { %v954_v37 = vpack.c.bf16 %v939_v20, %v938_v15  ;;  %v454_v25 = vpop.f32.mrf.mxu0  ;;  %v800_v34 = vmax.f32 %v452_v8, %v672_v21  ;;  %v801_v36 = vmax.f32 %v526_v58, %v746_v22 }
 0x1b8   :  { %v528_v26 = vpop.f32.mrf.mxu1 }
 0x1b9   :  { %v4664_v28 = vunpack.c.h.b16 %v954_v37  ;;  %v988_v29 = vunpack.c.l.b16 %v954_v37  ;;  %v858_v45 = vadd.f32 %v4329_v30, %v800_v34  ;;  %v859_v9 = vadd.f32 %v4331_v32, %v801_v36 }
 0x1bb   :  { %v1020_v27 = vpack.c.b16 %v4664_v28, %v987_v55  ;;  %v1019_v38 = vpack.c.b16 %v988_v29, %v986_v56  ;;  %v4667_v40 = vpack.c.b16 %v988_v29, %v988_v29  ;;  %v910_v50 = vmax.f32 %v858_v45, 0.0 }
 0x1bc   :  { %v911_v51 = vmax.f32 %v859_v9, 0.0 }
 0x1bd   :  { %1041 = vrot.lane.b32.xlu1 %v1020_v27, %s3900_s23  ;;  %1039 = vrot.lane.b32.xlu0 %v1019_v38, %s3900_s23 }
 0x1be   :  { %1495 = vmatmul.bf16.gmra.mxu0 %v4667_v40  ;;  %v674_v42 = vpop.f32.mrf.mxu2  ;;  %v748_v43 = vpop.f32.mrf.mxu3 }
 0x1bf   :  { %v802_v54 = vmax.f32 %v454_v25, %v674_v42  ;;  %v803_v46 = vmax.f32 %v528_v26, %v748_v43  ;;  %v1062_v47 = vpop.permute.xlu1 %1061  ;;  %v457_v11 = vpop.f32.mrf.mxu0 }
 0x1c0   :  { %v4677_v48 = vsel %vm1085_vm6, %v1062_v47, %v1064_v44  ;;  %v4680_v49 = vsel %vm1085_vm6, %v1048_v41, %v1062_v47  ;;  %v531_v55 = vpop.f32.mrf.mxu1  ;;  %v3603_v47 = vld [vmem:[%s5475_s4 + $0x174] sm:$0xf] }
 0x1c1   :  { %v860_v59 = vadd.f32 %v4329_v30, %v802_v54  ;;  %v861_v10 = vadd.f32 %v4331_v32, %v803_v46  ;;  %1544 = vmatmul.bf16.vlgmr.msrb.gmra.mxu2 %v4680_v49  ;;  %3171 = vmatmul.msk.bf16.vlgmr.msrb.gmra.mxu3 %vm1436_vm7, %v4677_v48 }
 0x1c3   :  { %v912_v52 = vmax.f32 %v860_v59, 0.0  ;;  %v913_v53 = vmax.f32 %v861_v10, 0.0  ;;  %v3167_v59 = vld [vmem:[%s5475_s4 + $0x178] sm:$0xf0] }
 0x1c4   :  { %v3170_v10 = vor.u32 %v3603_v47, %v3167_v59 }
 0x1c5   :  { %v940_v56 = vmax.f32 %v910_v50, %v912_v52  ;;  %v941_v57 = vmax.f32 %v911_v51, %v913_v53  ;;  %v3103_v50 = vld [vmem:[%s5475_s4 + $0xf8] sm:$0xf0]  ;;  %v3601_v53 = vld [vmem:[%s5475_s4 + $0x164] sm:$0xf] }
 0x1c6   :  { %v677_v62 = vpop.f32.mrf.mxu2  ;;  %v751_v0 = vpop.f32.mrf.mxu3  ;;  %1684 = vmatpush.bf16.msra.mxu2 %v3170_v10 }
 0x1c7   :  { %v955_v2 = vpack.c.bf16 %v941_v57, %v940_v56  ;;  %v804_v61 = vmax.f32 %v457_v11, %v677_v62  ;;  %v805_v7 = vmax.f32 %v531_v55, %v751_v0  ;;  %v459_v12 = vpop.f32.mrf.mxu0  ;;  %v1066_v37 = vpop.permute.xlu2 %1065  ;;  %v3159_v11 = vld [vmem:[%s5475_s4 + $0x168] sm:$0xf0]  ;;  %v3585_v62 = vld [vmem:[%s5475_s4 + $0xe4] sm:$0xf] }
 0x1c8   :  { %v533_v13 = vpop.f32.mrf.mxu1  ;;  %v3162_v56 = vor.u32 %v3601_v53, %v3159_v11  ;;  %v3119_v53 = vld [vmem:[%s5475_s4 + $0x118] sm:$0xf0] }
 0x1c9   :  { %v1010_v3 = vunpack.c.h.b16 %v955_v2  ;;  %v1009_v6 = vunpack.c.l.b16 %v955_v2  ;;  %v862_v63 = vadd.f32 %v4329_v30, %v804_v61  ;;  %v863_v18 = vadd.f32 %v4331_v32, %v805_v7 }
 0x1ca   :  { %1685 = vmatpush.bf16.msra.mxu2 %v3162_v56  ;;  %v3055_v56 = vld [vmem:[%s5475_s4 + $0x98] sm:$0xf0] }
 0x1cb   :  { %v1058_v60 = vpack.c.b16 %v1010_v3, %v4664_v28  ;;  %v1057_v8 = vpack.c.b16 %v1009_v6, %v988_v29  ;;  %v1021_v58 = vpack.c.b16 %v1009_v6, %v1009_v6  ;;  %v914_v34 = vmax.f32 %v862_v63, 0.0  ;;  %v3151_v6 = vld [vmem:[%s5475_s4 + $0x158] sm:$0xf0] }
 0x1cc   :  { %v915_v36 = vmax.f32 %v863_v18, 0.0  ;;  %v1022_v41 = vpack.c.b16 %v1010_v3, %v1010_v3 }
 0x1cd   :  { %1079 = vrot.lane.b32.xlu0 %v1058_v60, %s3897_s27  ;;  %1077 = vrot.lane.b32.xlu2 %v1057_v8, %s3897_s27  ;;  %v3583_v8 = vld [vmem:[%s5475_s4 + $0xd4] sm:$0xf] }
 0x1ce   :  { %1618 = vmatmul.bf16.vlgmr.msra.gmra.mxu0 %v4477_v19  ;;  %1043 = vrot.lane.b32.xlu1 %v1021_v58, %s3900_s23  ;;  %v679_v31 = vpop.f32.mrf.mxu2  ;;  %v753_v17 = vpop.f32.mrf.mxu3  ;;  %v3087_v58 = vld [vmem:[%s5475_s4 + $0xd8] sm:$0xf0] }
 0x1cf   :  { %v806_v15 = vmax.f32 %v459_v12, %v679_v31  ;;  %v807_v20 = vmax.f32 %v533_v13, %v753_v17  ;;  %v1030_v21 = vpop.permute.xlu1 %1029  ;;  %v1028_v22 = vpop.permute.xlu0 %1027  ;;  %v3090_v31 = vor.u32 %v3583_v8, %v3087_v58 }
 0x1d0   :  { %v1049_v25 = vsel %vm1047_vm5, %v1028_v22, %v1030_v21  ;;  %v4697_v26 = vsel %vm1047_vm5, %v4460_v4, %v1028_v22  ;;  %v4710_v9 = vpop.f32.mrf.mxu0  ;;  %v3581_v22 = vld [vmem:[%s5475_s4 + $0xc4] sm:$0xf] }
 0x1d1   :  { %v864_v29 = vadd.f32 %v4329_v30, %v806_v15  ;;  %v865_v19 = vadd.f32 %v4331_v32, %v807_v20  ;;  %1512 = vmatmul.bf16.gmra.mxu1 %v4697_v26  ;;  %v4703_v33 = vsel %vm1085_vm6, %v1049_v25, %v1066_v37  ;;  %v3597_v15 = vld [vmem:[%s5475_s4 + $0x144] sm:$0xf]  ;;  %v3143_v20 = vld [vmem:[%s5475_s4 + $0x148] sm:$0xf0] }
 0x1d2   :  { %1549 = vmatmul.bf16.gmra.mxu2 %v4703_v33 }
 0x1d3   :  { %v916_v27 = vmax.f32 %v864_v29, 0.0  ;;  %v917_v38 = vmax.f32 %v865_v19, 0.0  ;;  %v3595_v19 = vld [vmem:[%s5475_s4 + $0x134] sm:$0xf] }
 0x1d5   :  { %1045 = vrot.lane.b32.xlu2 %v1022_v41, %s3900_s23  ;;  %v942_v4 = vmax.f32 %v914_v34, %v916_v27  ;;  %v943_v42 = vmax.f32 %v915_v36, %v917_v38  ;;  %v3135_v34 = vld [vmem:[%s5475_s4 + $0x138] sm:$0xf0]  ;;  %v3579_v27 = vld [vmem:[%s5475_s4 + $0xb4] sm:$0xf] }
 0x1d6   :  { %v3138_v36 = vor.u32 %v3595_v19, %v3135_v34  ;;  %v3071_v38 = vld [vmem:[%s5475_s4 + $0xb8] sm:$0xf0] }
 0x1d7   :  { %v956_v43 = vpack.c.bf16 %v943_v42, %v942_v4  ;;  %v1034_v3 = vpop.permute.xlu2 %1033 }
 0x1d8   :  { %v4729_v52 = vpop.f32.mrf.mxu0 }
 0x1d9   :  { %v1056_v30 = vunpack.c.h.b16 %v956_v43  ;;  %v1055_v44 = vunpack.c.l.b16 %v956_v43  ;;  %v3593_v43 = vld [vmem:[%s5475_s4 + $0x124] sm:$0xf] }
 0x1db   :  { %v1060_v32 = vpack.c.b16 %v1056_v30, %v1056_v30  ;;  %v1059_v45 = vpack.c.b16 %v1055_v44, %v1055_v44  ;;  %v3127_v30 = vld [vmem:[%s5475_s4 + $0x128] sm:$0xf0] }
 0x1dd   :  { %1083 = vrot.lane.b32.xlu1 %v1060_v32, %s3897_s27  ;;  %1081 = vrot.lane.b32.xlu0 %v1059_v45, %s3897_s27  ;;  %v3130_v32 = vor.u32 %v3593_v43, %v3127_v30 }
 0x1de   :  { %1623 = vmatmul.bf16.gmra.mxu0 %v4462_v5  ;;  %v3587_v5 = vld [vmem:[%s5475_s4 + $0xf4] sm:$0xf] }
 0x1df   :  { %v1068_v54 = vpop.permute.xlu0 %1067  ;;  %v3106_v51 = vor.u32 %v3587_v5, %v3103_v50  ;;  %v3063_v5 = vld [vmem:[%s5475_s4 + $0xa8] sm:$0xf0] }
 0x1e0   :  { %v4713_v46 = vsel %vm1085_vm6, %v1066_v37, %v1068_v54  ;;  %v4749_v2 = vpop.f32.mrf.mxu0  ;;  %v3079_v37 = vld [vmem:[%s5475_s4 + $0xc8] sm:$0xf0] }
 0x1e1   :  { %3172 = vmatmul.msk.bf16.gmra.mxu3 %vm1436_vm7, %v4713_v46  ;;  %1647 = vmatpush.bf16.msra.mxu1 %v3106_v51  ;;  %v3082_v25 = vor.u32 %v3581_v22, %v3079_v37  ;;  %v3591_v51 = vld [vmem:[%s5475_s4 + $0x114] sm:$0xf] }
 0x1e2   :  { %v3122_v11 = vor.u32 %v3591_v51, %v3119_v53 }
 0x1e8   :  { %v4757_v7 = vpop.f32.mrf.mxu0 }
 0x1ee   :  { %1628 = vmatmul.bf16.gmra.mxu0 %v4509_v16  ;;  %v3095_v16 = vld [vmem:[%s5475_s4 + $0xe8] sm:$0xf0] }
 0x1ef   :  { %v1032_v55 = vpop.permute.xlu1 %1031  ;;  %v3098_v0 = vor.u32 %v3585_v62, %v3095_v16 }
 0x1f0   :  { %v4740_v57 = vsel %vm1047_vm5, %v4507_v14, %v1032_v55  ;;  %v3599_v14 = vld [vmem:[%s5475_s4 + $0x154] sm:$0xf]  ;;  %v1050_v12 = vsel %vm1047_vm5, %v1032_v55, %v1034_v3  ;;  %v4787_v21 = vpop.f32.mrf.mxu0  ;;  %v3047_v3 = vld [vmem:[%s5475_s4 + $0x88] sm:$0xf0] }
 0x1f1   :  { %1517 = vmatmul.bf16.gmra.mxu1 %v4740_v57  ;;  %v3154_v61 = vor.u32 %v3599_v14, %v3151_v6  ;;  %v3575_v55 = vld [vmem:[%s5475_s4 + $0x94] sm:$0xf] }
 0x1f2   :  { %1648 = vmatpush.bf16.msra.mxu1 %v3098_v0  ;;  %v3058_v62 = vor.u32 %v3575_v55, %v3055_v56  ;;  %v3573_v0 = vld [vmem:[%s5475_s4 + $0x84] sm:$0xf] }
 0x1f3   :  { %1686 = vmatpush.bf16.msra.mxu2 %v3154_v61  ;;  %v3050_v14 = vor.u32 %v3573_v0, %v3047_v3 }
 0x1f6   :  { %1649 = vmatpush.bf16.msra.mxu1 %v3090_v31  ;;  %v3111_v31 = vld [vmem:[%s5475_s4 + $0x108] sm:$0xf0] }
 0x1f7   :  { %v1036_v60 = vpop.permute.xlu2 %1035 }
 0x1f8   :  { %v4772_v18 = vsel %vm1047_vm5, %v4554_v23, %v1036_v60  ;;  %v3146_v23 = vor.u32 %v3597_v15, %v3143_v20  ;;  %v4796_v29 = vpop.f32.mrf.mxu0 }
 0x1fa   :  { %1687 = vmatpush.bf16.msra.mxu2 %v3146_v23  ;;  %1650 = vmatpush.bf16.msra.mxu1 %v3082_v25  ;;  %v1001_v23 = vpack.c.b16 %v4664_v28, %v4664_v28 }
 0x1fe   :  { %1633 = vmatmul.bf16.gmra.mxu0 %v4556_v24  ;;  %1688 = vmatpush.bf16.msra.mxu2 %v3138_v36 }
 0x1ff   :  { %v1072_v13 = vpop.permute.xlu1 %1071  ;;  %v1070_v63 = vpop.permute.xlu0 %1069 }
 0x200   :  { %v4768_v17 = vsel %vm1085_vm6, %v1070_v63, %v1072_v13  ;;  %v4775_v24 = vsel %vm1085_vm6, %v1050_v12, %v1070_v63  ;;  %v3589_v63 = vld [vmem:[%s5475_s4 + $0x104] sm:$0xf] }
 0x201   :  { %1522 = vmatmul.bf16.gmra.mxu1 %v4772_v18  ;;  %1554 = vmatmul.bf16.gmra.mxu2 %v4775_v24  ;;  %v3114_v15 = vor.u32 %v3589_v63, %v3111_v31 }
 0x202   :  { %3173 = vmatmul.msk.bf16.gmra.mxu3 %vm1436_vm7, %v4768_v17  ;;  %1689 = vmatpush.bf16.msra.mxu2 %v3130_v32 }
 0x206   :  { %1690 = vmatpush.bf16.msra.mxu2 %v3122_v11 }
 0x207   :  { %v1076_v45 = vpop.permute.xlu2 %1075 }
 0x20a   :  { %1691 = vmatpush.bf16.msra.mxu2 %v3114_v15 }
 0x20b   :  { %v4811_v42 = vpop.f32.mrf.mxu0 }
 0x20e   :  { %1638 = vmatmul.bf16.gmra.mxu0 %v4653_v1  ;;  %v3074_v1 = vor.u32 %v3579_v27, %v3071_v38 }
 0x20f   :  { %v1038_v44 = vpop.permute.xlu0 %1037 }
 0x210   :  { %1651 = vmatpush.bf16.msra.mxu1 %v3074_v1  ;;  %v1051_v54 = vsel %vm1047_vm5, %v1036_v60, %v1038_v44 }
 0x213   :  { %v4836_v10 = vpop.f32.mrf.mxu0 }
 0x216   :  { %v1508_v41 = vpop.f32.mrf.mxu1 }
 0x217   :  { %v1509_v4 = vadd.f32 %v1508_v41, %v4710_v9 }
 0x21e   :  { %1643 = vmatmul.bf16.gmra.mxu0 %v4667_v40  ;;  %v3577_v40 = vld [vmem:[%s5475_s4 + $0xa4] sm:$0xf] }
 0x21f   :  { %v1074_v47 = vpop.permute.xlu1 %1073  ;;  %v3066_v50 = vor.u32 %v3577_v40, %v3063_v5 }
 0x220   :  { %v4822_v9 = vsel %vm1085_vm6, %v1074_v47, %v1076_v45  ;;  %v4825_v59 = vsel %vm1085_vm6, %v1051_v54, %v1074_v47  ;;  %v4904_v45 = vpop.f32.mrf.mxu1 }
 0x221   :  { %1559 = vmatmul.bf16.gmra.mxu2 %v4825_v59  ;;  %3174 = vmatmul.msk.bf16.gmra.mxu3 %vm1436_vm7, %v4822_v9 }
 0x222   :  { %1652 = vmatpush.bf16.msra.mxu1 %v3066_v50 }
 0x226   :  { %1653 = vmatpush.bf16.msra.mxu1 %v3058_v62 }
 0x227   :  { %v1078_v60 = vpop.permute.xlu2 %1077 }
 0x22a   :  { %1654 = vmatpush.bf16.msra.mxu1 %v3050_v14 }
 0x22b   :  { %v4850_v16 = vpop.f32.mrf.mxu0 }
 0x22f   :  { %v1042_v6 = vpop.permute.xlu1 %1041  ;;  %v1040_v61 = vpop.permute.xlu0 %1039 }
 0x230   :  { %v1052_v8 = vsel %vm1047_vm5, %v1040_v61, %v1042_v6  ;;  %v4861_v58 = vsel %vm1047_vm5, %v4651_v35, %v1040_v61  ;;  %v1046_v28 = vpop.permute.xlu2 %1045 }
 0x231   :  { %1527 = vmatmul.bf16.gmra.mxu1 %v4861_v58  ;;  %v4865_v12 = vsel %vm1085_vm6, %v1052_v8, %v1078_v60 }
 0x232   :  { %1564 = vmatmul.bf16.gmra.mxu2 %v4865_v12 }
 0x233   :  { %v4868_v13 = vpop.f32.mrf.mxu0 }
 0x23b   :  { %v1496_v35 = vpop.f32.mrf.mxu0 }
 0x23f   :  { %v1080_v20 = vpop.permute.xlu0 %1079 }
 0x240   :  { %v4879_v22 = vsel %vm1085_vm6, %v1078_v60, %v1080_v20  ;;  %v1044_v37 = vpop.permute.xlu1 %1043 }
 0x241   :  { %v4882_v25 = vsel %vm1047_vm5, %v1001_v23, %v1044_v37  ;;  %3175 = vmatmul.msk.bf16.gmra.mxu3 %vm1436_vm7, %v4879_v22  ;;  %v1053_v41 = vsel %vm1047_vm5, %v1044_v37, %v1046_v28 }
 0x242   :  { %1532 = vmatmul.bf16.gmra.mxu1 %v4882_v25 }
 0x243   :  { %v1497_v19 = vpop.f32.mrf.mxu0 }
 0x244   :  { %v1545_v34 = vpop.f32.mrf.mxu2  ;;  %v1582_v27 = vpop.f32.mrf.mxu3 }
 0x245   :  { %v1546_v36 = vadd.f32 %v1545_v34, %v1509_v4 }
 0x247   :  { %v4887_v38 = vadd.f32 %v1582_v27, %v1546_v36 }
 0x24b   :  { %v4889_v1 = vpop.f32.mrf.mxu0 }
 0x24c   :  { %v4906_v54 = vpop.f32.mrf.mxu2  ;;  %v4910_v40 = vpop.f32.mrf.mxu3 }
 0x24e   :  { %v1513_v5 = vpop.f32.mrf.mxu1 }
 0x24f   :  { %v1084_v43 = vpop.permute.xlu1 %1083  ;;  %v1082_v30 = vpop.permute.xlu0 %1081  ;;  %v1514_v51 = vadd.f32 %v1513_v5, %v4749_v2 }
 0x250   :  { %v4893_v44 = vsel %vm1085_vm6, %v1082_v30, %v1084_v43  ;;  %v4896_v32 = vsel %vm1085_vm6, %v1053_v41, %v1082_v30 }
 0x251   :  { %1569 = vmatmul.bf16.gmra.mxu2 %v4896_v32  ;;  %3176 = vmatmul.msk.bf16.gmra.mxu3 %vm1436_vm7, %v4893_v44 }
 0x252   :  { %1655 = vmatmul.bf16.vlgmr.msra.gmra.mxu1 %v4598_v39 }
 0x253   :  { %v4902_v4 = vpop.f32.mrf.mxu0 }
 0x255   :  { %v1550_v50 = vpop.f32.mrf.mxu2 }
 0x256   :  { %v1551_v39 = vadd.f32 %v1550_v50, %v1514_v51 }
 0x25b   :  { %v4908_v47 = vpop.f32.mrf.mxu0 }
 0x25d   :  { %v4935_v2 = vpop.f32.mrf.mxu2 }
 0x261   :  { %1692 = vmatmul.bf16.vlgmr.msra.gmra.mxu2 %v4680_v49  ;;  %3177 = vmatmul.msk.bf16.vlgmr.msra.gmra.mxu3 %vm1436_vm7, %v4677_v48  ;;  %v4931_v49 = vpop.f32.mrf.mxu1 }
 0x262   :  { %1660 = vmatmul.bf16.gmra.mxu1 %v4697_v26 }
 0x263   :  { %v4917_v53 = vpop.f32.mrf.mxu0 }
 0x264   :  { %v1587_v11 = vpop.f32.mrf.mxu3 }
 0x265   :  { %v4919_v55 = vadd.f32 %v1587_v11, %v1551_v39 }
 0x267   :  { %1786 = vrot.lane.b32.xlu1 %v4919_v55, %s3898_s15 }
 0x26b   :  { %v4923_v56 = vpop.f32.mrf.mxu0 }
 0x26c   :  { %v4937_v62 = vpop.f32.mrf.mxu3 }
 0x26e   :  { %v1518_v0 = vpop.f32.mrf.mxu1 }
 0x271   :  { %1697 = vmatmul.bf16.gmra.mxu2 %v4703_v33  ;;  %3178 = vmatmul.msk.bf16.gmra.mxu3 %vm1436_vm7, %v4713_v46  ;;  %v1519_v33 = vadd.f32 %v1518_v0, %v4787_v21 }
 0x272   :  { %1665 = vmatmul.bf16.gmra.mxu1 %v4740_v57 }
 0x273   :  { %v4929_v48 = vpop.f32.mrf.mxu0 }
 0x276   :  { %v1520_v61 = vpop.f32.mrf.mxu1 }
 0x27b   :  { %v4933_v26 = vpop.f32.mrf.mxu0 }
 0x27e   :  { %v1523_v31 = vpop.f32.mrf.mxu1 }
 0x27f   :  { %v1524_v15 = vadd.f32 %v1523_v31, %v4811_v42 }
 0x281   :  { %1702 = vmatmul.bf16.gmra.mxu2 %v4775_v24  ;;  %3179 = vmatmul.msk.bf16.gmra.mxu3 %vm1436_vm7, %v4768_v17  ;;  %v1521_v24 = vadd.f32 %v1520_v61, %v4796_v29 }
 0x282   :  { %1670 = vmatmul.bf16.gmra.mxu1 %v4772_v18 }
 0x283   :  { %v4944_v46 = vpop.f32.mrf.mxu0 }
 0x284   :  { %v1555_v57 = vpop.f32.mrf.mxu2 }
 0x285   :  { %v1556_v3 = vadd.f32 %v1555_v57, %v1519_v33  ;;  %v1592_v14 = vpop.f32.mrf.mxu3 }
 0x286   :  { %v1525_v23 = vpop.f32.mrf.mxu1 }
 0x287   :  { %v4946_v6 = vadd.f32 %v1592_v14, %v1556_v3 }
 0x289   :  { %1794 = vrot.lane.b32.xlu2 %v4946_v6, %s3898_s15 }
 0x28b   :  { %v4951_v60 = vpop.f32.mrf.mxu0 }
 0x28c   :  { %v1557_v17 = vpop.f32.mrf.mxu2 }
 0x28d   :  { %v1558_v8 = vadd.f32 %v1557_v17, %v1521_v24  ;;  %v1594_v18 = vpop.f32.mrf.mxu3 }
 0x28f   :  { %v4953_v63 = vadd.f32 %v1594_v18, %v1558_v8 }
 0x291   :  { %1798 = vrot.lane.b32.xlu1 %v4953_v63, %s3898_s15  ;;  %1707 = vmatmul.bf16.gmra.mxu2 %v4825_v59 }
 0x292   :  { %1675 = vmatmul.bf16.gmra.mxu1 %v4861_v58  ;;  %3180 = vmatmul.msk.bf16.gmra.mxu3 %vm1436_vm7, %v4822_v9  ;;  %v1526_v9 = vadd.f32 %v1525_v23, %v4836_v10 }
 0x293   :  { %v4961_v21 = vpop.f32.mrf.mxu0 }
 0x29b   :  { %v1644_v29 = vpop.f32.mrf.mxu0 }
 0x2a1   :  { %1712 = vmatmul.bf16.gmra.mxu2 %v4865_v12 }
 0x2a2   :  { %1680 = vmatmul.bf16.gmra.mxu1 %v4882_v25  ;;  %3181 = vmatmul.msk.bf16.gmra.mxu3 %vm1436_vm7, %v4879_v22 }
 0x2a3   :  { %v1645_v35 = vpop.f32.mrf.mxu0 }
 0x2a4   :  { %v1560_v59 = vpop.f32.mrf.mxu2  ;;  %v1597_v20 = vpop.f32.mrf.mxu3 }
 0x2a5   :  { %v1561_v58 = vadd.f32 %v1560_v59, %v1524_v15 }
 0x2a7   :  { %v4968_v37 = vadd.f32 %v1597_v20, %v1561_v58 }
 0x2a9   :  { %1802 = vrot.lane.b32.xlu0 %v4968_v37, %s3898_s15 }
 0x2ac   :  { %v1562_v12 = vpop.f32.mrf.mxu2  ;;  %v1599_v25 = vpop.f32.mrf.mxu3 }
 0x2ad   :  { %v1563_v19 = vadd.f32 %v1562_v12, %v1526_v9 }
 0x2ae   :  { %v1528_v34 = vpop.f32.mrf.mxu1 }
 0x2af   :  { %v4973_v36 = vadd.f32 %v1599_v25, %v1563_v19  ;;  %v1529_v42 = vadd.f32 %v1528_v34, %v4850_v16 }
 0x2b1   :  { %1806 = vrot.lane.b32.xlu2 %v4973_v36, %s3898_s15  ;;  %1717 = vmatmul.bf16.gmra.mxu2 %v4896_v32 }
 0x2b2   :  { %3182 = vmatmul.msk.bf16.gmra.mxu3 %vm1436_vm7, %v4893_v44 }
 0x2b5   :  { %v1565_v22 = vpop.f32.mrf.mxu2 }
 0x2b6   :  { %v1566_v27 = vadd.f32 %v1565_v22, %v1529_v42  ;;  %v1530_v28 = vpop.f32.mrf.mxu1 }
 0x2b7   :  { %v1531_v50 = vadd.f32 %v1530_v28, %v4868_v13 }
 0x2bd   :  { %v1567_v5 = vpop.f32.mrf.mxu2 }
 0x2be   :  { %v1568_v51 = vadd.f32 %v1567_v5, %v1531_v50 }
 0x2bf   :  { %v1533_v10 = vpop.f32.mrf.mxu1 }
 0x2c4   :  { %v1602_v41 = vpop.f32.mrf.mxu3 }
 0x2c5   :  { %v4981_v43 = vadd.f32 %v1602_v41, %v1566_v27 }
 0x2c7   :  { %v1534_v30 = vpop.f32.mrf.mxu1 }
 0x2cc   :  { %v1604_v39 = vpop.f32.mrf.mxu3 }
 0x2cd   :  { %v4984_v11 = vadd.f32 %v1604_v39, %v1568_v51 }
 0x2cf   :  { %v1656_v32 = vpop.f32.mrf.mxu1 }
 0x2d0   :  { %v1657_v14 = vadd.f32 %v1656_v32, %v4889_v1 }
 0x2d4   :  { %v1570_v0 = vpop.f32.mrf.mxu2  ;;  %v1607_v44 = vpop.f32.mrf.mxu3 }
 0x2d7   :  { %v1658_v33 = vpop.f32.mrf.mxu1 }
 0x2d8   :  { %v1659_v13 = vadd.f32 %v1658_v33, %v4902_v4 }
 0x2dc   :  { %v1571_v16 = vpop.f32.mrf.mxu2  ;;  %v1608_v57 = vpop.f32.mrf.mxu3 }
 0x2df   :  { %v1661_v3 = vpop.f32.mrf.mxu1 }
 0x2e0   :  { %v1662_v50 = vadd.f32 %v1661_v3, %v4908_v47 }
 0x2e4   :  { %v1693_v61 = vpop.f32.mrf.mxu2  ;;  %v1730_v24 = vpop.f32.mrf.mxu3 }
 0x2e5   :  { %v1694_v17 = vadd.f32 %v1693_v61, %v1657_v14 }
 0x2e7   :  { %v4987_v8 = vadd.f32 %v1730_v24, %v1694_v17  ;;  %v1663_v18 = vpop.f32.mrf.mxu1 }
 0x2ec   :  { %v1695_v29 = vpop.f32.mrf.mxu2  ;;  %v1732_v31 = vpop.f32.mrf.mxu3 }
 0x2ed   :  { %v1696_v15 = vadd.f32 %v1695_v29, %v1659_v13 }
 0x2ef   :  { %v4990_v35 = vadd.f32 %v1732_v31, %v1696_v15  ;;  %v1666_v59 = vpop.f32.mrf.mxu1 }
 0x2f0   :  { %v1667_v19 = vadd.f32 %v1666_v59, %v4923_v56 }
 0x2f4   :  { %v1698_v20 = vpop.f32.mrf.mxu2  ;;  %v1735_v58 = vpop.f32.mrf.mxu3 }
 0x2f5   :  { %v1699_v51 = vadd.f32 %v1698_v20, %v1662_v50 }
 0x2f7   :  { %v1668_v23 = vpop.f32.mrf.mxu1  ;;  %v1736_v44 = vadd.f32 %v1735_v58, %v1699_v51 }
 0x2f8   :  { %v1669_v4 = vadd.f32 %v1668_v23, %v4929_v48  ;;  %v1664_v48 = vadd.f32 %v1663_v18, %v4917_v53  ;;  %v1516_v53 = vadd.f32 %v4931_v49, %v4757_v7 }
 0x2fa   :  { %v1553_v13 = vadd.f32 %v4935_v2, %v1516_v53 }
 0x2fc   :  { %v1700_v9 = vpop.f32.mrf.mxu2  ;;  %v1737_v12 = vpop.f32.mrf.mxu3  ;;  %v5010_v29 = vadd.f32 %v4937_v62, %v1553_v13  ;;  %v1511_v62 = vadd.f32 %v4904_v45, %v4729_v52  ;;  %v3257_v13 = vld [vmem:[%s5477_s6 + $0x90] sm:$0xf] }
 0x2fd   :  { %v1701_v57 = vadd.f32 %v1700_v9, %v1664_v48 }
 0x2ff   :  { %v1671_v1 = vpop.f32.mrf.mxu1  ;;  %v1738_v24 = vadd.f32 %v1737_v12, %v1701_v57 }
 0x300   :  { %v1672_v56 = vadd.f32 %v1671_v1, %v4933_v26  ;;  %v1795_v1 = vpop.permute.xlu2 %1794 }
 0x304   :  { %v1703_v25 = vpop.f32.mrf.mxu2  ;;  %v1740_v34 = vpop.f32.mrf.mxu3 }
 0x305   :  { %v1704_v42 = vadd.f32 %v1703_v25, %v1667_v19  ;;  %v1787_v19 = vpop.permute.xlu1 %1786 }
 0x307   :  { %v1741_v22 = vadd.f32 %v1740_v34, %v1704_v42  ;;  %v1673_v27 = vpop.f32.mrf.mxu1 }
 0x308   :  { %v1674_v47 = vadd.f32 %v1673_v27, %v4944_v46 }
 0x309   :  { %1796 = vrot.lane.b32.xlu0 %v1741_v22, %s3898_s15 }
 0x30c   :  { %v1705_v28 = vpop.f32.mrf.mxu2  ;;  %v1742_v10 = vpop.f32.mrf.mxu3 }
 0x30d   :  { %v1706_v41 = vadd.f32 %v1705_v28, %v1669_v4  ;;  %v1799_v34 = vpop.permute.xlu1 %1798 }
 0x30f   :  { %v1743_v30 = vadd.f32 %v1742_v10, %v1706_v41  ;;  %v1676_v5 = vpop.f32.mrf.mxu1  ;;  %v5040_v10 = vld [vmem:[%s5476_s5] ss:$0 sm:$0xff]  ;;  %s3902_s5 = smov 100  }
 0x310   :  { %v1677_v15 = vadd.f32 %v1676_v5, %v4951_v60  ;;  %v1548_v60 = vadd.f32 %v4906_v54, %v1511_v62 }
 0x311   :  { %1800 = vrot.lane.b32.xlu2 %v1743_v30, %s3898_s15 }
 0x312   :  { %v5026_v12 = vadd.f32 %v4910_v40, %v1548_v60 }
 0x314   :  { %v1708_v39 = vpop.f32.mrf.mxu2 }
 0x315   :  { %v1709_v32 = vadd.f32 %v1708_v39, %v1672_v56  ;;  %v1745_v0 = vpop.f32.mrf.mxu3 }
 0x317   :  { %v1746_v33 = vadd.f32 %v1745_v0, %v1709_v32  ;;  %v1678_v16 = vpop.f32.mrf.mxu1 }
 0x318   :  { %v1679_v59 = vadd.f32 %v1678_v16, %v4961_v21 }
 0x319   :  { %1804 = vrot.lane.b32.xlu1 %v1746_v33, %s3898_s15  ;;  %1788 = vrot.lane.b32.xlu2 %v1736_v44, %s3898_s15 }
 0x31b   :  { %v1803_v54 = vpop.permute.xlu0 %1802 }
 0x31c   :  { %v1710_v3 = vpop.f32.mrf.mxu2 }
 0x31d   :  { %v1711_v14 = vadd.f32 %v1710_v3, %v1674_v47  ;;  %v1747_v61 = vpop.f32.mrf.mxu3 }
 0x31f   :  { %v1748_v26 = vadd.f32 %v1747_v61, %v1711_v14  ;;  %v1681_v17 = vpop.f32.mrf.mxu1 }
 0x321   :  { %1808 = vrot.lane.b32.xlu0 %v1748_v26, %s3898_s15  ;;  %1792 = vrot.lane.b32.xlu1 %v1738_v24, %s3898_s15 }
 0x322   :  { %1810 = vrot.lane.b32.xlu2 %v4981_v43, %s3898_s15 }
 0x324   :  { %v1713_v18 = vpop.f32.mrf.mxu2 }
 0x325   :  { %v1750_v46 = vpop.f32.mrf.mxu3  ;;  %v1714_v20 = vadd.f32 %v1713_v18, %v1677_v15 }
 0x327   :  { %v1682_v31 = vpop.f32.mrf.mxu1  ;;  %v1751_v2 = vadd.f32 %v1750_v46, %v1714_v20  ;;  %v3612_v46 = vld [vmem:[%s5477_s6 + $0x38] sm:$0xff] }
 0x328   :  { %2086 = vmatpush.bf16.msrb.mxu0 %v3612_v46 }
 0x329   :  { %1790 = vrot.lane.b32.xlu0 %v5010_v29, %s3898_s15  ;;  %1814 = vrot.lane.b32.xlu1 %v4984_v11, %s3898_s15 }
 0x32c   :  { %v1715_v7 = vpop.f32.mrf.mxu2 }
 0x32d   :  { %v1716_v49 = vadd.f32 %v1715_v7, %v1679_v59  ;;  %v1752_v58 = vpop.f32.mrf.mxu3 }
 0x32f   :  { %v1753_v23 = vadd.f32 %v1752_v58, %v1716_v49  ;;  %v3611_v49 = vld [vmem:[%s5477_s6 + $0x30] sm:$0xff] }
 0x330   :  { %2087 = vmatpush.bf16.msrb.mxu0 %v3611_v49 }
 0x331   :  { %1812 = vrot.lane.b32.xlu0 %v1751_v2, %s3898_s15  ;;  %1816 = vrot.lane.b32.xlu2 %v1753_v23, %s3898_s15  ;;  %v3619_v2 = vld [vmem:[%s5477_s6 + $0x70] sm:$0xff] }
 0x332   :  { %1780 = vrot.lane.b32.xlu1 %v4987_v8, %s3898_s15  ;;  %v1807_v8 = vpop.permute.xlu2 %1806 }
 0x334   :  { %v1718_v9 = vpop.f32.mrf.mxu2 }
 0x335   :  { %v1755_v21 = vpop.f32.mrf.mxu3 }
 0x336   :  { %v3622_v21 = vld [vmem:[%s5477_s6 + $0x88] sm:$0xff] }
 0x339   :  { %1778 = vrot.lane.b32.xlu0 %v4887_v38, %s3898_s15  ;;  %1782 = vrot.lane.b32.xlu2 %v5026_v12, %s3898_s15 }
 0x33c   :  { %v1719_v52 = vpop.f32.mrf.mxu2 }
 0x33d   :  { %v1756_v45 = vpop.f32.mrf.mxu3 }
 0x341   :  { %1784 = vrot.lane.b32.xlu0 %v4990_v35, %s3898_s15 }
 0x36b   :  { %v1801_v25 = vpop.permute.xlu2 %1800 }
 0x36c   :  { %v1823_v22 = vsel %vm221_vm1, %v1799_v34, %v1801_v25  ;;  %v3621_v34 = vld [vmem:[%s5477_s6 + $0x80] sm:$0xff] }
 0x36d   :  { %v1843_v35 = vmax.f32 %v4953_v63, %v1823_v22  ;;  %v3609_v22 = vld [vmem:[%s5477_s6 + $0x20] sm:$0xff] }
 0x36f   :  { %v1857_v5 = vadd.f32 %v5040_v10, %v1843_v35 }
 0x371   :  { %v1867_v32 = vmax.f32 %v1857_v5, 0.0  ;;  %v3616_v5 = vld [vmem:[%s5477_s6 + $0x58] sm:$0xff] }
 0x373   :  { %v1789_v4 = vpop.permute.xlu2 %1788 }
 0x374   :  { %v1820_v63 = vsel %vm221_vm1, %v1787_v19, %v1789_v4 }
 0x375   :  { %v1840_v57 = vmax.f32 %v4919_v55, %v1820_v63  ;;  %v3623_v55 = vld [vmem:[%s5477_s6 + $0x90] sm:$0x30] }
 0x376   :  { %v3258_v15 = vor.u32 %v3623_v55, %v3257_v13 }
 0x377   :  { %v1854_v17 = vadd.f32 %v5040_v10, %v1840_v57 }
 0x378   :  { %v2084_v58 = vsel %vm2082_vm8, %v3258_v15, 0 }
 0x379   :  { %v1864_v23 = vmax.f32 %v1854_v17, 0.0  ;;  %2127 = vmatpush.bf16.msrb.mxu2 %v2084_v58 }
 0x37b   :  { %v1797_v42 = vpop.permute.xlu0 %1796 }
 0x37c   :  { %v1822_v40 = vsel %vm221_vm1, %v1795_v1, %v1797_v42  ;;  %v1811_v0 = vpop.permute.xlu2 %1810  ;;  %v3610_v1 = vld [vmem:[%s5477_s6 + $0x28] sm:$0xff] }
 0x37d   :  { %v1842_v28 = vmax.f32 %v4946_v6, %v1822_v40  ;;  %2128 = vmatpush.bf16.msrb.mxu2 %v3622_v21  ;;  %2088 = vmatpush.bf16.msrb.mxu0 %v3610_v1  ;;  %v3323_v1 = vld [vmem:[%s5479_s8 + $0x78] sm:$0xf] }
 0x37f   :  { %v1856_v30 = vadd.f32 %v5040_v10, %v1842_v28 }
 0x381   :  { %v1866_v56 = vmax.f32 %v1856_v30, 0.0  ;;  %2129 = vmatpush.bf16.msrb.mxu2 %v3621_v34  ;;  %2089 = vmatpush.bf16.msrb.mxu0 %v3609_v22  ;;  %v3608_v30 = vld [vmem:[%s5477_s6 + $0x18] sm:$0xff]  ;;  %v3337_v34 = vld [vmem:[%s5479_s8 + $0x9c] sm:$0xf0] }
 0x383   :  { %v1874_v16 = vmax.f32 %v1866_v56, %v1867_v32  ;;  %v3607_v56 = vld [vmem:[%s5477_s6 + $0x10] sm:$0xff]  ;;  %v3606_v32 = vld [vmem:[%s5477_s6 + $0x8] sm:$0xff] }
 0x385   :  { %v1879_v3 = vpack.c.bf16 %v1874_v16, %v1874_v16  ;;  %2090 = vmatpush.bf16.msrb.mxu0 %v3608_v30  ;;  %v3613_v16 = vld [vmem:[%s5477_s6 + $0x40] sm:$0xff] }
 0x387   :  { %v5069_v59 = vunpack.c.l.b16 %v1879_v3 }
 0x389   :  { %2091 = vmatpush.bf16.msrb.mxu0 %v3607_v56  ;;  %v3431_v56 = vld [vmem:[%s5479_s8 + $0x150] sm:$0xf] }
 0x38b   :  { %v1805_v27 = vpop.permute.xlu1 %1804  ;;  %v1817_v53 = vpop.permute.xlu2 %1816 }
 0x38c   :  { %v1824_v41 = vsel %vm221_vm1, %v1803_v54, %v1805_v27  ;;  %v3617_v27 = vld [vmem:[%s5477_s6 + $0x60] sm:$0xff] }
 0x38d   :  { %v1844_v50 = vmax.f32 %v4968_v37, %v1824_v41  ;;  %2092 = vmatpush.bf16.msrb.mxu0 %v3606_v32  ;;  %v3636_v32 = vld [vmem:[%s5479_s8 + $0x64] sm:$0xf] }
 0x38f   :  { %v1858_v44 = vadd.f32 %v5040_v10, %v1844_v50 }
 0x391   :  { %v1868_v47 = vmax.f32 %v1858_v44, 0.0  ;;  %v3605_v44 = vld [vmem:[%s5477_s6] sm:$0xff] }
 0x392   :  { %2093 = vmatpush.bf16.msrb.mxu0 %v3605_v44 }
 0x393   :  { %v1793_v51 = vpop.permute.xlu1 %1792  ;;  %v1809_v39 = vpop.permute.xlu0 %1808 }
 0x394   :  { %v1825_v6 = vsel %vm221_vm1, %v1807_v8, %v1809_v39  ;;  %v3618_v8 = vld [vmem:[%s5477_s6 + $0x68] sm:$0xff]  ;;  %v3615_v39 = vld [vmem:[%s5477_s6 + $0x50] sm:$0xff] }
 0x395   :  { %v1845_v33 = vmax.f32 %v4973_v36, %v1825_v6 }
 0x397   :  { %v1859_v48 = vadd.f32 %v5040_v10, %v1845_v33 }
 0x399   :  { %v1869_v37 = vmax.f32 %v1859_v48, 0.0  ;;  %v1783_v48 = vpop.permute.xlu2 %1782 }
 0x39b   :  { %v1815_v14 = vpop.permute.xlu1 %1814  ;;  %v1791_v61 = vpop.permute.xlu0 %1790  ;;  %v1875_v24 = vmax.f32 %v1868_v47, %v1869_v37 }
 0x39c   :  { %v1821_v26 = vsel %vm221_vm1, %v1791_v61, %v1793_v51  ;;  %v1827_v31 = vsel %vm221_vm1, %v1815_v14, %v1817_v53 }
 0x39d   :  { %v1841_v36 = vmax.f32 %v5010_v29, %v1821_v26  ;;  %v1880_v18 = vpack.c.bf16 %v1875_v24, %v1875_v24  ;;  %v3620_v29 = vld [vmem:[%s5477_s6 + $0x78] sm:$0xff]  ;;  %v1847_v62 = vmax.f32 %v4984_v11, %v1827_v31 }
 0x39e   :  { %2104 = vmatpush.bf16.msrb.mxu1 %v3620_v29 }
 0x39f   :  { %v1855_v20 = vadd.f32 %v5040_v10, %v1841_v36  ;;  %v1891_v7 = vunpack.c.l.b16 %v1880_v18  ;;  %v1861_v19 = vadd.f32 %v5040_v10, %v1847_v62  ;;  %v3646_v62 = vld [vmem:[%s5479_s8 + $0xb0] sm:$0xf0] }
 0x3a1   :  { %v1865_v60 = vmax.f32 %v1855_v20, 0.0  ;;  %v1900_v9 = vpack.c.b16 %v1891_v7, %v5069_v59  ;;  %v1893_v28 = vpack.c.b16 %v1891_v7, %v1891_v7  ;;  %v5140_v7 = vld [vmem:[%s5478_s7] ss:$0 sm:$0xff] }
 0x3a2   :  { %2105 = vmatpush.bf16.msrb.mxu1 %v3619_v2 }
 0x3a3   :  { %1902 = vrot.lane.b32.xlu1 %v1900_v9, %s3901_s10  ;;  %v1813_v52 = vpop.permute.xlu0 %1812  ;;  %v1873_v45 = vmax.f32 %v1864_v23, %v1865_v60  ;;  %v3335_v60 = vld [vmem:[%s5479_s8 + $0x90] sm:$0xf] }
 0x3a4   :  { %v1826_v11 = vsel %vm221_vm1, %v1811_v0, %v1813_v52  ;;  %v3614_v0 = vld [vmem:[%s5477_s6 + $0x48] sm:$0xff]  ;;  %v1781_v47 = vpop.permute.xlu1 %1780  ;;  %v3643_v52 = vld [vmem:[%s5479_s8 + $0x98] sm:$0xf0] }
 0x3a5   :  { %v1846_v54 = vmax.f32 %v4981_v43, %v1826_v11  ;;  %v1878_v25 = vpack.c.bf16 %v1873_v45, %v1873_v45  ;;  %v1871_v43 = vmax.f32 %v1861_v19, 0.0  ;;  %v3336_v45 = vor.u32 %v3643_v52, %v3335_v60  ;;  %v3645_v11 = vld [vmem:[%s5479_s8 + $0xac] sm:$0xf]  ;;  %v3640_v19 = vld [vmem:[%s5479_s8 + $0x80] sm:$0xf0] }
 0x3a6   :  { %2106 = vmatpush.bf16.msrb.mxu1 %v3618_v8  ;;  %v3349_v8 = vld [vmem:[%s5479_s8 + $0xb4] sm:$0xf0] }
 0x3a7   :  { %v1860_v42 = vadd.f32 %v5040_v10, %v1846_v54  ;;  %v1886_v40 = vunpack.c.l.b16 %v1878_v25  ;;  %v3352_v54 = vor.u32 %v3645_v11, %v3349_v8  ;;  %v3642_v25 = vld [vmem:[%s5479_s8 + $0x94] sm:$0xf]  ;;  %v3625_v11 = vld [vmem:[%s5479_s8 + $0x8] sm:$0xf0] }
 0x3a8   :  { %v3340_v22 = vor.u32 %v3642_v25, %v3337_v34  ;;  %v3624_v25 = vld [vmem:[%s5479_s8 + $0x4] sm:$0xf]  ;;  %v3265_v34 = vld [vmem:[%s5479_s8 + $0xc] sm:$0xf0] }
 0x3a9   :  { %v1870_v4 = vmax.f32 %v1860_v42, 0.0  ;;  %v1892_v35 = vpack.c.b16 %v5069_v59, %v1886_v40 }
 0x3aa   :  { %2107 = vmatpush.bf16.msrb.mxu1 %v3617_v27  ;;  %v3639_v27 = vld [vmem:[%s5479_s8 + $0x7c] sm:$0xf] }
 0x3ab   :  { %1896 = vrot.lane.b32.xlu1 %v1893_v28, %s3902_s5  ;;  %1894 = vrot.lane.b32.xlu2 %v1892_v35, %s3902_s5  ;;  %v1876_v41 = vmax.f32 %v1870_v4, %v1871_v43  ;;  %v1779_v33 = vpop.permute.xlu0 %1778  ;;  %v3324_v43 = vor.u32 %v3640_v19, %v3323_v1  ;;  %v3325_v4 = vld [vmem:[%s5479_s8 + $0x84] sm:$0xf0]  ;;  %v3670_v35 = vld [vmem:[%s5479_s8 + $0x170] sm:$0xf0] }
 0x3ac   :  { %v1818_v37 = vsel %vm221_vm1, %v1779_v33, %v1781_v47  ;;  %v3443_v28 = vld [vmem:[%s5479_s8 + $0x168] sm:$0xf]  ;;  %v3313_v33 = vld [vmem:[%s5479_s8 + $0x6c] sm:$0xf0]  ;;  %v3263_v1 = vld [vmem:[%s5479_s8] sm:$0xf] }
 0x3ad   :  { %v1881_v50 = vpack.c.bf16 %v1876_v41, %v1876_v41  ;;  %v1838_v14 = vmax.f32 %v4887_v38, %v1818_v37  ;;  %v1889_v38 = vpack.c.b16 %v5069_v59, %v5069_v59  ;;  %v3347_v59 = vld [vmem:[%s5479_s8 + $0xa8] sm:$0xf]  ;;  %v3634_v37 = vld [vmem:[%s5479_s8 + $0x50] sm:$0xf0] }
 0x3ae   :  { %2108 = vmatpush.bf16.msrb.mxu1 %v3616_v5  ;;  %v3348_v21 = vor.u32 %v3646_v62, %v3347_v59  ;;  %v3311_v5 = vld [vmem:[%s5479_s8 + $0x60] sm:$0xf]  ;;  %v3299_v47 = vld [vmem:[%s5479_s8 + $0x48] sm:$0xf] }
 0x3af   :  { %v1899_v51 = vunpack.c.l.b16 %v1881_v50  ;;  %v1852_v24 = vadd.f32 %v5040_v10, %v1838_v14  ;;  %v3637_v50 = vld [vmem:[%s5479_s8 + $0x68] sm:$0xf0] }
 0x3b0   :  { %2523 = vmatpush.bf16.msrb.mxu3 %v3348_v21  ;;  %v3312_v44 = vor.u32 %v3637_v50, %v3311_v5  ;;  %v3277_v21 = vld [vmem:[%s5479_s8 + $0x24] sm:$0xf0]  ;;  %v3451_v5 = vld [vmem:[%s5479_s8 + $0x170] sm:$0xf] }
 0x3b1   :  { %v1901_v6 = vpack.c.b16 %v1899_v51, %v1899_v51  ;;  %v1862_v17 = vmax.f32 %v1852_v24, 0.0  ;;  %v3444_v51 = vor.u32 %v3670_v35, %v3443_v28  ;;  %v3661_v28 = vld [vmem:[%s5479_s8 + $0x128] sm:$0xf0] }
 0x3b2   :  { %2109 = vmatpush.bf16.msrb.mxu1 %v3615_v39 }
 0x3b3   :  { %1904 = vrot.lane.b32.xlu0 %v1901_v6, %s3901_s10  ;;  %v1785_v63 = vpop.permute.xlu0 %1784  ;;  %v3328_v6 = vor.u32 %v3639_v27, %v3325_v4  ;;  %2536 = vmatpush.bf16.msra.mxu0 %v3444_v51  ;;  %s3904_s10 = smov 52   ;;  %v3407_v4 = vld [vmem:[%s5479_s8 + $0x120] sm:$0xf]  ;;  %v3671_v51 = vld [vmem:[%s5479_s8 + $0x178] sm:$0xf0] }
 0x3b4   :  { %v1819_v57 = vsel %vm221_vm1, %v1783_v48, %v1785_v63  ;;  %2524 = vmatpush.bf16.msrb.mxu3 %v3336_v45  ;;  %v3664_v48 = vld [vmem:[%s5479_s8 + $0x140] sm:$0xf0]  ;;  %v3408_v35 = vor.u32 %v3661_v28, %v3407_v4  ;;  %v3331_v4 = vld [vmem:[%s5479_s8 + $0x80] sm:$0xf]  ;;  %v3641_v28 = vld [vmem:[%s5479_s8 + $0x88] sm:$0xf0] }
 0x3b5   :  { %v1839_v3 = vmax.f32 %v5026_v12, %v1819_v57 }
 0x3b6   :  { %2110 = vmatpush.bf16.msrb.mxu1 %v3614_v0  ;;  %v3667_v0 = vld [vmem:[%s5479_s8 + $0x158] sm:$0xf0] }
 0x3b7   :  { %v1853_v61 = vadd.f32 %v5040_v10, %v1839_v3  ;;  %v3432_v63 = vor.u32 %v3667_v0, %v3431_v56  ;;  %v3452_v56 = vor.u32 %v3671_v51, %v3451_v5  ;;  %v3332_v5 = vor.u32 %v3641_v28, %v3331_v4  ;;  %v3684_v4 = vld [vmem:[#allocation2 + $0x48] sm:$0xff]  ;;  %v3683_v28 = vld [vmem:[#allocation2 + $0x40] sm:$0xff] }
 0x3b8   :  { %2525 = vmatpush.bf16.msrb.mxu3 %v3324_v43  ;;  %v3268_v43 = vor.u32 %v3624_v25, %v3265_v34  ;;  %v3656_v25 = vld [vmem:[%s5479_s8 + $0x100] sm:$0xf0] }
 0x3b9   :  { %v1863_v26 = vmax.f32 %v1853_v61, 0.0  ;;  %v3316_v61 = vor.u32 %v3636_v32, %v3313_v33  ;;  %2537 = vmatpush.bf16.msra.mxu0 %v3432_v63  ;;  %v3666_v32 = vld [vmem:[%s5479_s8 + $0x154] sm:$0xf]  ;;  %v3439_v33 = vld [vmem:[%s5479_s8 + $0x158] sm:$0xf] }
 0x3ba   :  { %2111 = vmatpush.bf16.msrb.mxu1 %v3613_v16  ;;  %v3419_v16 = vld [vmem:[%s5479_s8 + $0x138] sm:$0xf]  ;;  %v3668_v63 = vld [vmem:[%s5479_s8 + $0x160] sm:$0xf0] }
 0x3bb   :  { %v1872_v53 = vmax.f32 %v1862_v17, %v1863_v26  ;;  %v3420_v24 = vor.u32 %v3664_v48, %v3419_v16  ;;  %v3300_v26 = vor.u32 %v3634_v37, %v3299_v47  ;;  %v3633_v17 = vld [vmem:[%s5479_s8 + $0x4c] sm:$0xf]  ;;  %v3440_v48 = vor.u32 %v3668_v63, %v3439_v33  ;;  %v3655_v47 = vld [vmem:[%s5479_s8 + $0xf8] sm:$0xf0] }
 0x3bc   :  { %2526 = vmatpush.bf16.msrb.mxu3 %v3312_v44  ;;  %v3433_v44 = vld [vmem:[%s5479_s8 + $0x15c] sm:$0xf0]  ;;  %v3663_v37 = vld [vmem:[%s5479_s8 + $0x13c] sm:$0xf] }
 0x3bd   :  { %v1877_v36 = vpack.c.bf16 %v1872_v53, %v1872_v53  ;;  %v3301_v53 = vld [vmem:[%s5479_s8 + $0x54] sm:$0xf0]  ;;  %2538 = vmatpush.bf16.msra.mxu0 %v3420_v24  ;;  %v3436_v16 = vor.u32 %v3666_v32, %v3433_v44  ;;  %v3367_v32 = vld [vmem:[%s5479_s8 + $0xc8] sm:$0xf] }
 0x3be   :  { %2562 = vmatpush.bf16.msra.mxu1 %v3352_v54  ;;  %v3264_v54 = vor.u32 %v3625_v11, %v3263_v1  ;;  %v3385_v11 = vld [vmem:[%s5479_s8 + $0xfc] sm:$0xf0] }
 0x3bf   :  { %v1885_v18 = vunpack.c.l.b16 %v1877_v36 }
 0x3c0   :  { %2527 = vmatpush.bf16.msrb.mxu3 %v3300_v26  ;;  %v3371_v26 = vld [vmem:[%s5479_s8 + $0xd8] sm:$0xf] }
 0x3c1   :  { %v1888_v13 = vpack.c.b16 %v1886_v40, %v1885_v18  ;;  %2539 = vmatpush.bf16.msra.mxu0 %v3408_v35  ;;  %v3379_v35 = vld [vmem:[%s5479_s8 + $0xe0] sm:$0xf] }
 0x3c2   :  { %2563 = vmatpush.bf16.msra.mxu1 %v3340_v22 }
 0x3c6   :  { %2564 = vmatpush.bf16.msra.mxu1 %v3328_v6  ;;  %v3658_v6 = vld [vmem:[%s5479_s8 + $0x110] sm:$0xf0] }
 0x3ca   :  { %2565 = vmatpush.bf16.msra.mxu1 %v3316_v61  ;;  %v3665_v61 = vld [vmem:[%s5479_s8 + $0x148] sm:$0xf0] }
 0x405   :  { %v1895_v55 = vpop.permute.xlu2 %1894 }
 0x406   :  { %v1909_v46 = vsel %vm1906_vm9, %v1888_v13, %v1895_v55 }
 0x407   :  { %2094 = vmatmul.bf16.vlgmr.msrb.gmra.mxu0 %v1909_v46  ;;  %v3631_v46 = vld [vmem:[%s5479_s8 + $0x38] sm:$0xf0] }
 0x415   :  { %v1903_v31 = vpop.permute.xlu1 %1902 }
 0x416   :  { %v1917_v12 = vsel %vm1915_vm10, %v1895_v55, %v1903_v31  ;;  %3259 = vmatmul.msk.bf16.vlgmr.msrb.gmra.mxu2 %vm2077_vm11, %v1903_v31  ;;  %v3287_v55 = vld [vmem:[%s5479_s8 + $0x30] sm:$0xf] }
 0x417   :  { %2112 = vmatmul.bf16.vlgmr.msrb.gmra.mxu1 %v1917_v12 }
 0x41d   :  { %v1897_v10 = vpop.permute.xlu1 %1896 }
 0x41e   :  { %v1913_v15 = vsel %vm1906_vm9, %v1889_v38, %v1897_v10  ;;  %v3304_v38 = vor.u32 %v3633_v17, %v3301_v53  ;;  %v3652_v53 = vld [vmem:[%s5479_s8 + $0xe0] sm:$0xf0] }
 0x41f   :  { %2099 = vmatmul.bf16.gmra.mxu0 %v1913_v15  ;;  %v3630_v15 = vld [vmem:[%s5479_s8 + $0x34] sm:$0xf] }
 0x420   :  { %2566 = vmatpush.bf16.msra.mxu1 %v3304_v38 }
 0x425   :  { %v1905_v29 = vpop.permute.xlu0 %1904 }
 0x426   :  { %3260 = vmatmul.msk.bf16.gmra.mxu2 %vm2077_vm11, %v1905_v29  ;;  %v1920_v20 = vsel %vm1915_vm10, %v1897_v10, %v1905_v29  ;;  %v3288_v10 = vor.u32 %v3631_v46, %v3287_v55  ;;  %v3289_v29 = vld [vmem:[%s5479_s8 + $0x3c] sm:$0xf0]  ;;  %v3673_v46 = vld [vmem:[%s5479_s8 + $0x188] sm:$0x70] }
 0x427   :  { %2117 = vmatmul.bf16.gmra.mxu1 %v1920_v20  ;;  %v3292_v62 = vor.u32 %v3630_v15, %v3289_v29  ;;  %v3455_v55 = vld [vmem:[%s5479_s8 + $0x180] sm:$0xf] }
 0x428   :  { %2528 = vmatpush.bf16.msrb.mxu3 %v3288_v10  ;;  %v3456_v38 = vor.u32 %v3673_v46, %v3455_v55  ;;  %v3372_v10 = vor.u32 %v3652_v53, %v3371_v26  ;;  %v3359_v15 = vld [vmem:[%s5479_s8 + $0xc0] sm:$0xf]  ;;  %v3295_v26 = vld [vmem:[%s5479_s8 + $0x38] sm:$0xf]  ;;  %v3463_v53 = vld [vmem:[%s5479_s8 + $0x188] sm:$0xf] }
 0x429   :  { %2567 = vmatpush.bf16.msra.mxu1 %v3292_v62  ;;  %v3403_v62 = vld [vmem:[%s5479_s8 + $0x110] sm:$0xf]  ;;  %v3283_v46 = vld [vmem:[%s5479_s8 + $0x20] sm:$0xf] }
 0x484   :  { %v2095_v49 = vpop.f32.mrf.mxu0 }
 0x485   :  { %v2096_v58 = vadd.f32 %v5140_v7, %v2095_v49 }
 0x48c   :  { %v2097_v2 = vpop.f32.mrf.mxu0 }
 0x48d   :  { %v2098_v39 = vadd.f32 %v5140_v7, %v2097_v2 }
 0x494   :  { %v2113_v23 = vpop.f32.mrf.mxu1 }
 0x495   :  { %v2114_v9 = vadd.f32 %v2113_v23, %v2096_v58  ;;  %v3628_v58 = vld [vmem:[%s5479_s8 + $0x20] sm:$0xf0] }
 0x499   :  { %v2131_v42 = vpop.f32.mrf.mxu2 }
 0x49a   :  { %v5173_v40 = vadd.f32 %v2131_v42, %v2114_v9  ;;  %v3627_v9 = vld [vmem:[%s5479_s8 + $0x1c] sm:$0xf] }
 0x49b   :  { %v3280_v19 = vor.u32 %v3627_v9, %v3277_v21 }
 0x49c   :  { %v2100_v41 = vpop.f32.mrf.mxu0  ;;  %v2115_v30 = vpop.f32.mrf.mxu1  ;;  %v2140_v44 = vmax.f32 %v5173_v40, 0.0  ;;  %v3457_v40 = vld [vmem:[%s5479_s8 + $0x18c] sm:$0x70] }
 0x49d   :  { %v2116_v57 = vadd.f32 %v2115_v30, %v2098_v39  ;;  %v2101_v31 = vadd.f32 %v5140_v7, %v2100_v41  ;;  %v3275_v7 = vld [vmem:[%s5479_s8 + $0x18] sm:$0xf]  ;;  %2568 = vmatpush.bf16.msra.mxu1 %v3280_v19  ;;  %v3669_v41 = vld [vmem:[%s5479_s8 + $0x16c] sm:$0xf]  ;;  %v3395_v39 = vld [vmem:[%s5479_s8 + $0x108] sm:$0xf] }
 0x49e   :  { %v3276_v60 = vor.u32 %v3628_v58, %v3275_v7  ;;  %v3445_v30 = vld [vmem:[%s5479_s8 + $0x174] sm:$0xf0]  ;;  %v3396_v0 = vor.u32 %v3658_v6, %v3395_v39  ;;  %v3657_v7 = vld [vmem:[%s5479_s8 + $0x10c] sm:$0xf]  ;;  %v3644_v19 = vld [vmem:[%s5479_s8 + $0xa0] sm:$0xf0] }
 0x49f   :  { %v3448_v50 = vor.u32 %v3669_v41, %v3445_v30  ;;  %v3653_v41 = vld [vmem:[%s5479_s8 + $0xe8] sm:$0xf0]  ;;  %v3319_v39 = vld [vmem:[%s5479_s8 + $0x68] sm:$0xf]  ;;  %v3638_v6 = vld [vmem:[%s5479_s8 + $0x70] sm:$0xf0] }
 0x4a0   :  { %2529 = vmatpush.bf16.msrb.mxu3 %v3276_v60  ;;  %2540 = vmatpush.bf16.msra.mxu0 %v3396_v0  ;;  %v3659_v60 = vld [vmem:[%s5479_s8 + $0x118] sm:$0xf0]  ;;  %v3380_v51 = vor.u32 %v3653_v41, %v3379_v35  ;;  %v3650_v0 = vld [vmem:[%s5479_s8 + $0xd0] sm:$0xf0]  ;;  %v3320_v63 = vor.u32 %v3638_v6, %v3319_v39  ;;  %v2233_v35 = vld [vmem:[%s5480_s9] sm:$0x7] }
 0x4a1   :  { %v2133_v3 = vpop.f32.mrf.mxu2  ;;  %2569 = vmatpush.bf16.msra.mxu1 %v3268_v43  ;;  %2575 = vmatpush.bf16.msra.mxu2 %v3448_v50  ;;  %v3404_v1 = vor.u32 %v3659_v60, %v3403_v62  ;;  %v3373_v43 = vld [vmem:[%s5479_s8 + $0xe4] sm:$0xf0]  ;;  %v3648_v50 = vld [vmem:[%s5479_s8 + $0xc4] sm:$0xf]  ;;  %v3678_v62 = vld [vmem:[#allocation2 + $0x18] sm:$0xff]  ;;  %v2235_v41 = vperm.slane %v2233_v35, 0 }
 0x4a2   :  { %v2134_v14 = vadd.f32 %v2133_v3, %v2116_v57  ;;  %v3383_v57 = vld [vmem:[%s5479_s8 + $0xf0] sm:$0xf]  ;;  %v3421_v3 = vld [vmem:[%s5479_s8 + $0x144] sm:$0xf0] }
 0x4a3   :  { %v3384_v24 = vor.u32 %v3655_v47, %v3383_v57  ;;  %v3424_v17 = vor.u32 %v3663_v37, %v3421_v3  ;;  %v3672_v37 = vld [vmem:[%s5479_s8 + $0x184] sm:$0xf]  ;;  %v3307_v3 = vld [vmem:[%s5479_s8 + $0x50] sm:$0xf] }
 0x4a4   :  { %v2141_v36 = vmax.f32 %v2134_v14, 0.0  ;;  %v2102_v18 = vpop.f32.mrf.mxu0  ;;  %v2118_v13 = vpop.f32.mrf.mxu1  ;;  %2530 = vmatpush.bf16.msrb.mxu3 %v3264_v54  ;;  %v3427_v14 = vld [vmem:[%s5479_s8 + $0x140] sm:$0xf]  ;;  %v3391_v54 = vld [vmem:[%s5479_s8 + $0xf8] sm:$0xf] }
 0x4a5   :  { %v2119_v49 = vadd.f32 %v2118_v13, %v2101_v31  ;;  %2614 = vmatpush.bf16.msrb.mxu1 %v3452_v56  ;;  %2576 = vmatpush.bf16.msra.mxu2 %v3436_v16  ;;  %v3409_v18 = vld [vmem:[%s5479_s8 + $0x12c] sm:$0xf0]  ;;  %v3428_v13 = vor.u32 %v3665_v61, %v3427_v14  ;;  %v3415_v31 = vld [vmem:[%s5479_s8 + $0x128] sm:$0xf]  ;;  %v3368_v16 = vor.u32 %v3650_v0, %v3367_v32  ;;  %v3635_v61 = vld [vmem:[%s5479_s8 + $0x58] sm:$0xf0] }
 0x4a6   :  { %v2144_v12 = vpack.c.bf16 %v2141_v36, %v2141_v36  ;;  %v3660_v36 = vld [vmem:[%s5479_s8 + $0x124] sm:$0xf]  ;;  %2541 = vmatpush.bf16.msra.mxu0 %v3384_v24  ;;  %v3361_v56 = vld [vmem:[%s5479_s8 + $0xcc] sm:$0xf0]  ;;  %v3460_v14 = vor.u32 %v3672_v37, %v3457_v40  ;;  %v3308_v24 = vor.u32 %v3635_v61, %v3307_v3 }
 0x4a7   :  { %v3412_v29 = vor.u32 %v3660_v36, %v3409_v18  ;;  %v3364_v33 = vor.u32 %v3648_v50, %v3361_v56  ;;  %v3674_v18 = vld [vmem:[%s5479_s8 + $0x190] sm:$0x70] }
 0x4a8   :  { %v2147_v20 = vunpack.c.l.b16 %v2144_v12  ;;  %v3662_v12 = vld [vmem:[%s5479_s8 + $0x130] sm:$0xf0]  ;;  %v2518_v36 = vsel %vm2513_vm12, %v3460_v14, 0  ;;  %v3464_v55 = vor.u32 %v3674_v18, %v3463_v53 }
 0x4a9   :  { %v2136_v2 = vpop.f32.mrf.mxu2  ;;  %2615 = vmatpush.bf16.msrb.mxu1 %v3440_v48  ;;  %2577 = vmatpush.bf16.msra.mxu2 %v3424_v17  ;;  %v3416_v58 = vor.u32 %v3662_v12, %v3415_v31  ;;  %v2143_v48 = vpack.c.bf16 %v2140_v44, %v2140_v44  ;;  %v3632_v17 = vld [vmem:[%s5479_s8 + $0x40] sm:$0xf0]  ;;  %v3629_v31 = vld [vmem:[%s5479_s8 + $0x28] sm:$0xf0] }
 0x4aa   :  { %v2148_v23 = vpack.c.b16 %v2147_v20, %v2147_v20  ;;  %v2137_v59 = vadd.f32 %v2136_v2, %v2119_v49  ;;  %v2515_v20 = vsel %vm2513_vm12, %v3456_v38, 0  ;;  %v3649_v49 = vld [vmem:[%s5479_s8 + $0xc8] sm:$0xf0]  ;;  %v3397_v2 = vld [vmem:[%s5479_s8 + $0x114] sm:$0xf0]  ;;  %2542 = vmatpush.bf16.msra.mxu0 %v3372_v10  ;;  %v2521_v12 = vsel %vm2513_vm12, %v3464_v55, 0 }
 0x4ab   :  { %2556 = vmatpush.bf16.msra.mxu3 %v2515_v20  ;;  %v3360_v9 = vor.u32 %v3649_v49, %v3359_v15  ;;  %v3400_v21 = vor.u32 %v3657_v7, %v3397_v2  ;;  %v3284_v38 = vor.u32 %v3629_v31, %v3283_v46  ;;  %v3271_v10 = vld [vmem:[%s5479_s8 + $0x8] sm:$0xf]  ;;  %v3626_v15 = vld [vmem:[%s5479_s8 + $0x10] sm:$0xf0]  ;;  %v3682_v7 = vld [vmem:[#allocation2 + $0x38] sm:$0xff] }
 0x4ac   :  { %v2142_v52 = vmax.f32 %v2137_v59, 0.0  ;;  %2149 = vrot.lane.b32.xlu2 %v2148_v23, %s3903_s26  ;;  %v2120_v45 = vpop.f32.mrf.mxu1  ;;  %v3355_v23 = vld [vmem:[%s5479_s8 + $0xb0] sm:$0xf]  ;;  %v3647_v59 = vld [vmem:[%s5479_s8 + $0xb8] sm:$0xf0] }
 0x4ad   :  { %2616 = vmatpush.bf16.msrb.mxu1 %v3428_v13  ;;  %2578 = vmatpush.bf16.msra.mxu2 %v3412_v29  ;;  %v3654_v45 = vld [vmem:[%s5479_s8 + $0xf4] sm:$0xf]  ;;  %v3296_v13 = vor.u32 %v3632_v17, %v3295_v26  ;;  %v3272_v29 = vor.u32 %v3626_v15, %v3271_v10  ;;  %v3690_v2 = vld [vmem:[#allocation2 + $0x78] sm:$0xff]  ;;  %v3864_v10 = vld [vmem:[%s5482_s11] ss:$0 sm:$0xff] }
 0x4ae   :  { %v2145_v8 = vpack.c.bf16 %v2142_v52, %v2142_v52  ;;  %v3356_v52 = vor.u32 %v3647_v59, %v3355_v23  ;;  %2543 = vmatpush.bf16.msra.mxu0 %v3360_v9  ;;  %v3388_v34 = vor.u32 %v3654_v45, %v3385_v11  ;;  %v3680_v23 = vld [vmem:[#allocation2 + $0x28] sm:$0xff]  ;;  %v3679_v59 = vld [vmem:[#allocation2 + $0x20] sm:$0xff]  ;;  %v3677_v9 = vld [vmem:[#allocation2 + $0x10] sm:$0xff] }
 0x4af   :  { %v3688_v45 = vld [vmem:[#allocation2 + $0x68] sm:$0xff] }
 0x4b0   :  { %v2152_v42 = vunpack.c.l.b16 %v2145_v8  ;;  %v3343_v8 = vld [vmem:[%s5479_s8 + $0x98] sm:$0xf] }
 0x4b1   :  { %v2138_v22 = vpop.f32.mrf.mxu2  ;;  %2617 = vmatpush.bf16.msrb.mxu1 %v3416_v58  ;;  %2579 = vmatpush.bf16.msra.mxu2 %v3400_v21  ;;  %v3681_v58 = vld [vmem:[#allocation2 + $0x30] sm:$0xff] }
 0x4b2   :  { %v2153_v27 = vpack.c.b16 %v2152_v42, %v2152_v42  ;;  %2601 = vmatpush.bf16.msrb.mxu0 %v3356_v52  ;;  %v3344_v42 = vor.u32 %v3644_v19, %v3343_v8  ;;  %v3651_v22 = vld [vmem:[%s5479_s8 + $0xdc] sm:$0xf]  ;;  %v3689_v21 = vld [vmem:[#allocation2 + $0x70] sm:$0xff]  ;;  %v3676_v52 = vld [vmem:[#allocation2 + $0x8] sm:$0xff] }
 0x4b3   :  { %v3376_v30 = vor.u32 %v3651_v22, %v3373_v43  ;;  %v3675_v8 = vld [vmem:[#allocation2] sm:$0xff] }
 0x4b4   :  { %2154 = vrot.lane.b32.xlu0 %v2153_v27, %s3904_s10  ;;  %v3392_v27 = vor.u32 %v3656_v25, %v3391_v54  ;;  %v3687_v19 = vld [vmem:[#allocation2 + $0x60] sm:$0xff]  ;;  %v3686_v54 = vld [vmem:[#allocation2 + $0x58] sm:$0xff] }
 0x4b5   :  { %2618 = vmatpush.bf16.msrb.mxu1 %v3404_v1  ;;  %2580 = vmatpush.bf16.msra.mxu2 %v3388_v34  ;;  %v3685_v34 = vld [vmem:[#allocation2 + $0x50] sm:$0xff]  ;;  %v3691_v22 = vld [vmem:[#allocation2 + $0x80] sm:$0x70] }
 0x4b6   :  { %2602 = vmatpush.bf16.msrb.mxu0 %v3344_v42  ;;  %v3534_v42 = vld [vmem:[#allocation2 + $0x80] sm:$0xf] }
 0x4b9   :  { %2619 = vmatpush.bf16.msrb.mxu1 %v3392_v27  ;;  %2581 = vmatpush.bf16.msra.mxu2 %v3376_v30  ;;  %v3535_v27 = vor.u32 %v3691_v22, %v3534_v42 }
 0x4ba   :  { %2603 = vmatpush.bf16.msrb.mxu0 %v3332_v5 }
 0x4bb   :  { %v2789_v43 = vsel %vm2513_vm12, %v3535_v27, 0 }
 0x4bd   :  { %2620 = vmatpush.bf16.msrb.mxu1 %v3380_v51  ;;  %2582 = vmatpush.bf16.msra.mxu2 %v3364_v33 }
 0x4be   :  { %2604 = vmatpush.bf16.msrb.mxu0 %v3320_v63 }
 0x4c1   :  { %2621 = vmatpush.bf16.msrb.mxu1 %v3368_v16  ;;  %2634 = vmatpush.bf16.msrb.mxu2 %v2521_v12  ;;  %v2237_v16 = vperm.slane %v2233_v35, 2 }
 0x4c2   :  { %2605 = vmatpush.bf16.msrb.mxu0 %v3308_v24 }
 0x4c6   :  { %2606 = vmatpush.bf16.msrb.mxu0 %v3296_v13 }
 0x4ca   :  { %2607 = vmatpush.bf16.msrb.mxu0 %v3284_v38 }
 0x4ce   :  { %2608 = vmatpush.bf16.msrb.mxu0 %v3272_v29 }
 0x506   :  { %v2150_v57 = vpop.permute.xlu2 %2149 }
 0x507   :  { %v2159_v47 = vsel %vm2156_vm13, %v2143_v48, %v2150_v57  ;;  %v2236_v48 = vperm.slane %v2233_v35, 1 }
 0x508   :  { %2531 = vmatmul.bf16.vlgmr.msrb.gmra.mxu3 %v2159_v47  ;;  %2570 = vmatmul.bf16.vlgmr.msra.gmra.mxu1 %v2159_v47 }
 0x509   :  { %2595 = vmatpush.bf16.msrb.mxu3 %v2518_v36 }
 0x526   :  { %v2155_v20 = vpop.permute.xlu0 %2154 }
 0x527   :  { %v2163_v49 = vsel %vm2161_vm14, %v2150_v57, %v2155_v20  ;;  %3465 = vmatmul.msk.bf16.vlgmr.msra.gmra.mxu3 %vm2510_vm15, %v2155_v20 }
 0x528   :  { %2544 = vmatmul.bf16.vlgmr.msra.gmra.mxu0 %v2163_v49  ;;  %2583 = vmatmul.bf16.vlgmr.msra.gmra.mxu2 %v2163_v49 }
 0x529   :  { %2622 = vmatmul.bf16.vlgmr.msrb.gmra.mxu1 %v2163_v49  ;;  %2791 = vmatpush.bf16.msra.mxu3 %v3682_v7 }
 0x52a   :  { %2804 = vmatpush.bf16.msra.mxu2 %v3690_v2  ;;  %2824 = vmatpush.bf16.msra.mxu0 %v2789_v43 }
 0x52d   :  { %2792 = vmatpush.bf16.msra.mxu3 %v3681_v58 }
 0x52e   :  { %2805 = vmatpush.bf16.msra.mxu2 %v3689_v21 }
 0x531   :  { %2793 = vmatpush.bf16.msra.mxu3 %v3680_v23 }
 0x532   :  { %2806 = vmatpush.bf16.msra.mxu2 %v3688_v45 }
 0x535   :  { %2794 = vmatpush.bf16.msra.mxu3 %v3679_v59 }
 0x536   :  { %2807 = vmatpush.bf16.msra.mxu2 %v3687_v19 }
 0x537   :  { %3466 = vmatmul.msk.bf16.vlgmr.msrb.gmra.mxu3 %vm2510_vm15, %v2155_v20 }
 0x538   :  { %2609 = vmatmul.bf16.vlgmr.msrb.gmra.mxu0 %v2159_v47  ;;  %3467 = vmatmul.msk.bf16.vlgmr.msrb.gmra.mxu2 %vm2510_vm15, %v2155_v20 }
 0x539   :  { %2795 = vmatpush.bf16.msra.mxu3 %v3678_v62 }
 0x53a   :  { %2808 = vmatpush.bf16.msra.mxu2 %v3686_v54 }
 0x53d   :  { %2796 = vmatpush.bf16.msra.mxu3 %v3677_v9 }
 0x53e   :  { %2809 = vmatpush.bf16.msra.mxu2 %v3685_v34 }
 0x541   :  { %2797 = vmatpush.bf16.msra.mxu3 %v3676_v52 }
 0x542   :  { %2810 = vmatpush.bf16.msra.mxu2 %v3684_v4 }
 0x545   :  { %2798 = vmatpush.bf16.msra.mxu3 %v3675_v8 }
 0x546   :  { %2811 = vmatpush.bf16.msra.mxu2 %v3683_v28 }
 0x585   :  { %v2571_v60 = vpop.f32.mrf.mxu1 }
 0x586   :  { %v2572_v40 = vadd.f32 %v2571_v60, %v2236_v48 }
 0x58b   :  { %v2532_v1 = vpop.f32.mrf.mxu3 }
 0x58c   :  { %v2533_v50 = vadd.f32 %v2532_v1, %v2235_v41 }
 0x58d   :  { %v2573_v11 = vpop.f32.mrf.mxu1 }
 0x593   :  { %v2534_v25 = vpop.f32.mrf.mxu3 }
 0x5a5   :  { %v2545_v30 = vpop.f32.mrf.mxu0 }
 0x5a6   :  { %v2623_v5 = vpop.f32.mrf.mxu1  ;;  %v2546_v51 = vadd.f32 %v2545_v30, %v2533_v50 }
 0x5aa   :  { %v2558_v56 = vpop.f32.mrf.mxu3 }
 0x5ab   :  { %v2559_v39 = vadd.f32 %v2558_v56, %v2546_v51  ;;  %v2584_v6 = vpop.f32.mrf.mxu2 }
 0x5ac   :  { %v2585_v3 = vadd.f32 %v2584_v6, %v2572_v40 }
 0x5ad   :  { %v2640_v32 = vmax.f32 %v2559_v39, 0.0  ;;  %v2547_v0 = vpop.f32.mrf.mxu0 }
 0x5ae   :  { %v2625_v44 = vpop.f32.mrf.mxu1 }
 0x5af   :  { %v2643_v33 = vpack.c.bf16 %v2640_v32, %v2640_v32 }
 0x5b1   :  { %2799 = vmatmul.bf16.vlgmr.msra.gmra.mxu3 %v2643_v33 }
 0x5b2   :  { %v2560_v63 = vpop.f32.mrf.mxu3 }
 0x5b3   :  { %v2586_v57 = vpop.f32.mrf.mxu2 }
 0x5b5   :  { %v2610_v47 = vpop.f32.mrf.mxu0 }
 0x5b6   :  { %v2611_v37 = vadd.f32 %v2610_v47, %v2237_v16 }
 0x5b8   :  { %v2624_v61 = vadd.f32 %v2623_v5, %v2611_v37 }
 0x5ba   :  { %v2597_v14 = vpop.f32.mrf.mxu3 }
 0x5bb   :  { %v2598_v24 = vadd.f32 %v2597_v14, %v2585_v3  ;;  %v2636_v26 = vpop.f32.mrf.mxu2 }
 0x5bc   :  { %v2637_v17 = vadd.f32 %v2636_v26, %v2624_v61 }
 0x5bd   :  { %v2641_v53 = vmax.f32 %v2598_v24, 0.0  ;;  %v2612_v36 = vpop.f32.mrf.mxu0 }
 0x5be   :  { %v2642_v18 = vmax.f32 %v2637_v17, 0.0 }
 0x5bf   :  { %v2644_v13 = vpack.c.bf16 %v2641_v53, %v2641_v53 }
 0x5c0   :  { %v2645_v55 = vpack.c.bf16 %v2642_v18, %v2642_v18 }
 0x5c1   :  { %2812 = vmatmul.bf16.vlgmr.msra.gmra.mxu2 %v2644_v13 }
 0x5c2   :  { %v2599_v46 = vpop.f32.mrf.mxu3  ;;  %3536 = vmatmul.msk.bf16.vlgmr.msra.gmra.mxu0 %vm2510_vm15, %v2645_v55 }
 0x5c3   :  { %v2638_v31 = vpop.f32.mrf.mxu2 }
 0x634   :  { %v2800_v12 = vpop.f32.mrf.mxu3 }
 0x635   :  { %v2801_v29 = vadd.f32 %v3864_v10, %v2800_v12 }
 0x63c   :  { %v2802_v38 = vpop.f32.mrf.mxu3 }
 0x63f   :  { %v2826_v15 = vpop.f32.mrf.mxu0 }
 0x644   :  { %v2813_v20 = vpop.f32.mrf.mxu2 }
 0x645   :  { %v2814_v49 = vadd.f32 %v2813_v20, %v2801_v29 }
 0x647   :  { %v2827_v7 = vadd.f32 %v2826_v15, %v2814_v49  ;;  %v2828_v58 = vpop.f32.mrf.mxu0 }
 0x649   :  { %2830 = vmax.xlane.f32.xlu1 %v2827_v7 }
 0x64c   :  { %v2815_v2 = vpop.f32.mrf.mxu2 }
 0x6bc   :  { %v2831_v23 = vpop.xlane.xlu1 %2830 }
 0x6bd   :  { %v2832_v59 = vsub.f32 %v2827_v7, %v2831_v23 }
 0x6bf   :  { %v2833_v62 = vmul.f32 1.442695, %v2832_v59 }
 0x6c1   :  { %3865 = vpow2.f32 %v2833_v62 }
 0x6c7   :  { %v3866_v60 = vpop.eup %3865 }
 0x6c8   :  { %2835 = vadd.xlane.f32.xlu2 %v3866_v60 }
 0x73b   :  { %v2836_v9 = vpop.xlane.xlu2 %2835 }
 0x73c   :  { %3867 = vlog2.f32 %v2836_v9 }
 0x742   :  { %v3868_v21 = vpop.eup %3867 }
 0x743   :  { %v2838_v52 = vmul.f32 0.6931472, %v3868_v21 }
 0x745   :  { %v2839_v45 = vadd.f32 %v2838_v52, %v2831_v23 }
 0x747   :  { %v2840_v1 = vsub.f32 %v2827_v7, %v2839_v45 }
 0x749   :  { %2841 = vst [vmem:[%s5483_s12] sm:$0xff] %v2840_v1 }
 0x74a   :  { %2846 = vsyncpa [#allocation3], 1 }

</bundles_post_ra>
